<compile_context>
chip_gen: v5e
topology: v5e:2x2
jax: 0.10.0
libtpu: 0.0.40
codegen_flags: <defaults>
</compile_context>

<pallas_src>
import functools

import jax
import jax.numpy as jnp
from jax import lax
from jax.experimental import pallas as pl
from jax.experimental.pallas import tpu as pltpu

KSIZE = 7
PAD = 3                    # padding = 3 for kernel_size 7


def _spatial_attention_kernel(w_ref, x_ref, o_ref, sum_ref, max_ref, pad_ref,
                              *, C, CB, NB, H, W, chunk, last_valid,
                              need_cmask):
    # w_ref  : (49,)              SMEM  conv weight (flattened (1,1,7,7))
    # x_ref  : (NB, CB, H*W)      VMEM  one (batch-block, channel-block) tile
    # o_ref  : (NB, H*W)          VMEM  attention map (written on last C step)
    # sum_ref, max_ref : (NB, H*W) f32  VMEM scratch (channel-reduction accs)
    # pad_ref: (NB, H*W + 6*W + 6) f32  VMEM scratch (flat zero-halo conv buf)
    HW = H * W
    OFF = PAD * W + PAD            # 3*W + 3 halo on each side of the flat map

    c_step = pl.program_id(1)
    last_c = pl.num_programs(1) - 1

    # ---- init accumulators at the first channel step of this batch block ----
    @pl.when(c_step == 0)
    def _():
        sum_ref[...] = jnp.zeros((NB, HW), jnp.float32)
        max_ref[...] = jnp.full((NB, HW), -jnp.inf, jnp.float32)

    # ---- single streaming pass: channel sum and channel max together ----
    def accum(xc):
        xc = xc.astype(jnp.float32)
        sum_ref[...] = sum_ref[...] + jnp.sum(xc, axis=1)
        max_ref[...] = jnp.maximum(max_ref[...], jnp.max(xc, axis=1))

    def stream(nch):
        # nch is STATIC: number of valid channels of this block to process.
        # Ragged last blocks just read fewer channels (no masks, no iota).
        nfull, rem = divmod(nch, chunk)
        if nfull == 1 and rem == 0:
            accum(x_ref[:, :chunk, :])
        else:
            if nfull:
                def body(i, carry):
                    off = pl.multiple_of(i * chunk, chunk)
                    accum(x_ref[:, pl.ds(off, chunk), :])
                    return carry
                lax.fori_loop(0, nfull, body, 0, unroll=nfull <= 8)
            if rem:
                accum(x_ref[:, pl.ds(nfull * chunk, rem), :])

    if need_cmask:
        @pl.when(c_step != last_c)
        def _():
            stream(CB)

        @pl.when(c_step == last_c)
        def _():
            stream(last_valid)
    else:
        stream(CB)

    # ---- finalize: 7x7 zero-pad conv + sigmoid, only on the last C step ----
    @pl.when(c_step == last_c)
    def _():
        # mean + max, mean as sum * (1/C) with a precomputed scalar.
        s = sum_ref[...] * jnp.float32(1.0 / C) + max_ref[...]      # (NB, HW)

        # Flat zero-halo buffer; only the halo is cleared (interior is fully
        # overwritten every time, so no cross-grid-step persistence is assumed
        # — safe under megacore splitting of the batch axis).
        pad_ref[:, :OFF] = jnp.zeros((NB, OFF), jnp.float32)
        pad_ref[:, OFF + HW:] = jnp.zeros((NB, OFF), jnp.float32)
        pad_ref[:, OFF:OFF + HW] = s

        # Column index of every flattened pixel -> per-dx row-wrap masks.
        col = lax.broadcasted_iota(jnp.int32, (NB, HW), 1) % W

        # 49 taps = static lane-offset slices of the flat buffer.  Vertical
        # (dy) out-of-image taps read the zero halo; horizontal (dx) row-wrap
        # is removed with ONE mask per dx applied after the ky-sum (6 selects
        # total).  Partial accumulators break the serial add chains.
        acc0 = jnp.zeros((NB, HW), jnp.float32)
        acc1 = jnp.zeros((NB, HW), jnp.float32)
        for kx in range(KSIZE):
            dx = kx - PAD
            p0 = jnp.zeros((NB, HW), jnp.float32)
            p1 = jnp.zeros((NB, HW), jnp.float32)
            for ky in range(KSIZE):
                dy = ky - PAD
                start = OFF + dy * W + dx           # static, always in-bounds
                v = pad_ref[:, start:start + HW]
                wgt = w_ref[ky * KSIZE + kx]
                if ky % 2 == 0:
                    p0 = p0 + wgt * v
                else:
                    p1 = p1 + wgt * v
            part = p0 + p1
            if dx < 0:
                part = jnp.where(col >= -dx, part, 0.0)
            elif dx > 0:
                part = jnp.where(col < (W - dx), part, 0.0)
            if kx % 2 == 0:
                acc0 = acc0 + part
            else:
                acc1 = acc1 + part
        o_ref[...] = jax.nn.sigmoid(acc0 + acc1).astype(o_ref.dtype)


def _vmem_limit_bytes():
    # Generation-aware scoped-VMEM limit: ~3/4 of physical capacity
    # (v7x: 64 MiB -> 48 MiB, v5e/v6e: 128 MiB -> 96 MiB), never below 32 MiB.
    try:
        cap = int(pltpu.get_tpu_info().vmem_capacity_bytes)
    except Exception:
        cap = 64 << 20   # conservative fallback, safe on every generation
    return int(max(32 << 20, min((cap * 3) // 4, 96 << 20)))


def _pick_blocks(N, C, HW, itemsize, budget):
    # Channel chunk tied to dtype sublane packing (f32->8, bf16->16, int8->32),
    # at least 16 to cut fori_loop trip count while keeping whole packed vregs.
    pack = 8 * max(1, 4 // itemsize)
    chunk = max(16, pack)

    # Batch grouping: prefer a multiple of 8 so the (NB, HW) accumulators and
    # the output writeback use full sublanes; no ">= 2 blocks" constraint (on
    # single-TC chips it only multiplies finalize passes).
    NB = 1
    for cand in (32, 16, 8, 4, 2):
        if N % cand == 0 and cand * HW * itemsize * min(C, chunk) <= budget:
            NB = cand
            break

    # Channel block: all of C if it fits, else the largest multiple of `chunk`
    # within the budget.  Shrink NB before letting CB overshoot the budget.
    while NB > 1 and (budget // (NB * HW * itemsize)) < min(C, chunk):
        NB //= 2
    cmax = max(1, budget // (NB * HW * itemsize))
    if C <= cmax:
        CB = C
    elif cmax >= chunk:
        CB = (cmax // chunk) * chunk
    else:
        # Even one chunk of channels exceeds the budget (very large H*W).
        # TODO(synk): add a spatial (H*W) grid axis for very large feature maps.
        CB = min(chunk, C)
    return NB, CB, chunk


def spatial_attention(x, weight):
    """x: (N, C, H, W); weight: (1, 1, 7, 7), no bias -> (N, 1, H, W)."""
    N, C, H, W = x.shape
    HW = H * W
    itemsize = jnp.dtype(x.dtype).itemsize

    vmem_limit = _vmem_limit_bytes()
    # Per-step input-tile budget: 4-16 MiB (HBM-bound phase wants big tiles;
    # 2x double-buffered input + output + 3 scratch stay well under the limit).
    budget = max(4 << 20, min(16 << 20, vmem_limit // 6))

    NB, CB, chunk = _pick_blocks(N, C, HW, itemsize, budget)
    nC = pl.cdiv(C, CB)
    need_cmask = (C % CB) != 0
    last_valid = C - (nC - 1) * CB        # valid channels in the last C block
    OFF = PAD * W + PAD
    HWP = HW + 2 * OFF

    # Free reshapes (contiguous memory): lane-dense (N, C, H*W) input layout.
    x_flat = x.reshape(N, C, HW)
    w_flat = weight.reshape(KSIZE * KSIZE).astype(jnp.float32)

    kernel = functools.partial(
        _spatial_attention_kernel,
        C=C, CB=CB, NB=NB, H=H, W=W, chunk=chunk,
        last_valid=last_valid, need_cmask=need_cmask)

    out_flat = pl.pallas_call(
        kernel,
        out_shape=jax.ShapeDtypeStruct((N, HW), x.dtype),
        grid=(N // NB, nC),
        in_specs=[
            pl.BlockSpec(memory_space=pltpu.MemorySpace.SMEM),        # weight
            pl.BlockSpec((NB, CB, HW), lambda b, c: (b, c, 0)),       # x
        ],
        out_specs=pl.BlockSpec((NB, HW), lambda b, c: (b, 0)),
        scratch_shapes=[
            pltpu.VMEM((NB, HW), jnp.float32),    # channel-sum accumulator
            pltpu.VMEM((NB, HW), jnp.float32),    # channel-max accumulator
            pltpu.VMEM((NB, HWP), jnp.float32),   # flat zero-halo conv buffer
        ],
        compiler_params=pltpu.CompilerParams(
            dimension_semantics=("parallel", "arbitrary"),
            vmem_limit_bytes=vmem_limit,
        ),
    )(w_flat, x_flat)

    # Free reshape back to NCHW attention-map layout.
    return out_flat.reshape(N, 1, H, W)


def _reference(x, weight):
    # Pure-JAX reference mirroring the PyTorch forward.
    avg_out = jnp.mean(x, axis=1, keepdims=True)
    max_out = jnp.max(x, axis=1, keepdims=True)
    s = avg_out + max_out
    y = lax.conv_general_dilated(
        s, weight, window_strides=(1, 1), padding=[(PAD, PAD), (PAD, PAD)],
        dimension_numbers=("NCHW", "OIHW", "NCHW"))
    return jax.nn.sigmoid(y)


if __name__ == "__main__":
    key = jax.random.PRNGKey(0)
    kx, kw = jax.random.split(key)

    N, C, H, W = 2, 4, 16, 16
    x = jax.random.normal(kx, (N, C, H, W), dtype=jnp.float32)

    # Deterministic conv weight, shape (out=1, in=1, 7, 7) as in nn.Conv2d(1,1,7).
    fan_in = 1 * KSIZE * KSIZE
    bound = 1.0 / (fan_in ** 0.5)
    weight = jax.random.uniform(kw, (1, 1, KSIZE, KSIZE), jnp.float32,
                                minval=-bound, maxval=bound)

    out = spatial_attention(x, weight)
    out = jax.block_until_ready(out)

    ref = _reference(x, weight)
    assert out.shape == (N, 1, H, W)
    assert jnp.allclose(out, ref, atol=1e-5, rtol=1e-5), "mismatch vs reference"

    print("KERNEL_OK")
</pallas_src>

<mosaic_0001>
module attributes {stable_mosaic.version = 11 : i64} {
  func.func @_spatial_attention_kernel(%arg0: i32, %arg1: i32, %arg2: memref<49xf32, #tpu.memory_space<smem>>, %arg3: memref<2x4x256xf32, #tpu.memory_space<vmem>>, %arg4: memref<2x256xf32, #tpu.memory_space<vmem>>, %arg5: memref<2x256xf32, #tpu.memory_space<vmem>>, %arg6: memref<2x256xf32, #tpu.memory_space<vmem>>, %arg7: memref<2x358xf32, #tpu.memory_space<vmem>>) attributes {dimension_semantics = [#tpu.dimension_semantics<parallel>, #tpu.dimension_semantics<arbitrary>], iteration_bounds = array<i64: 1, 1>, scalar_prefetch = 0 : i64, scratch_operands = 3 : i64, tpu.core_type = #tpu.core_type<tc>, window_params = [{transform_indices = @transform_0, window_bounds = array<i64: 49>}, {transform_indices = @transform_1, window_bounds = array<i64: 2, 4, 256>}, {transform_indices = @transform_2, window_bounds = array<i64: 2, 256>}]} {
    %c0_i32 = arith.constant 0 : i32
    %0 = arith.cmpi eq, %arg1, %c0_i32 : i32
    %1 = arith.extui %0 : i1 to i32
    %c0_i32_0 = arith.constant 0 : i32
    %2 = arith.cmpi ne, %1, %c0_i32_0 : i32
    scf.if %2 {
      %cst_14 = arith.constant 0.000000e+00 : f32
      %15 = vector.broadcast %cst_14 : f32 to vector<2x256xf32>
      %c0_15 = arith.constant 0 : index
      %c0_16 = arith.constant 0 : index
      %16 = vector.load %arg5[%c0_15, %c0_16] : memref<2x256xf32, #tpu.memory_space<vmem>>, vector<2x256xf32>
      tpu.vector_store %arg5[%c0_15, %c0_16], %15 {strides = array<i32>} : memref<2x256xf32, #tpu.memory_space<vmem>>, vector<2x256xf32>,
      %cst_17 = arith.constant 0xFF800000 : f32
      %17 = vector.broadcast %cst_17 : f32 to vector<2x256xf32>
      %c0_18 = arith.constant 0 : index
      %c0_19 = arith.constant 0 : index
      %18 = vector.load %arg6[%c0_18, %c0_19] : memref<2x256xf32, #tpu.memory_space<vmem>>, vector<2x256xf32>
      tpu.vector_store %arg6[%c0_18, %c0_19], %17 {strides = array<i32>} : memref<2x256xf32, #tpu.memory_space<vmem>>, vector<2x256xf32>,
    } else {
    }
    %c0 = arith.constant 0 : index
    %c0_1 = arith.constant 0 : index
    %c0_2 = arith.constant 0 : index
    %3 = vector.load %arg3[%c0, %c0_1, %c0_2] : memref<2x4x256xf32, #tpu.memory_space<vmem>>, vector<2x4x256xf32>
    %c0_3 = arith.constant 0 : index
    %c0_4 = arith.constant 0 : index
    %4 = vector.load %arg5[%c0_3, %c0_4] : memref<2x256xf32, #tpu.memory_space<vmem>>, vector<2x256xf32>
    %cst = arith.constant dense<0.000000e+00> : vector<2x256xf32>
    %5 = vector.multi_reduction <add>, %3, %cst [1] : vector<2x4x256xf32> to vector<2x256xf32>
    %6 = arith.addf %4, %5 : vector<2x256xf32>
    %c0_5 = arith.constant 0 : index
    %c0_6 = arith.constant 0 : index
    %7 = vector.load %arg5[%c0_5, %c0_6] : memref<2x256xf32, #tpu.memory_space<vmem>>, vector<2x256xf32>
    tpu.vector_store %arg5[%c0_5, %c0_6], %6 {strides = array<i32>} : memref<2x256xf32, #tpu.memory_space<vmem>>, vector<2x256xf32>,
    %c0_7 = arith.constant 0 : index
    %c0_8 = arith.constant 0 : index
    %8 = vector.load %arg6[%c0_7, %c0_8] : memref<2x256xf32, #tpu.memory_space<vmem>>, vector<2x256xf32>
    %cst_9 = arith.constant dense<0xFF800000> : vector<2x256xf32>
    %9 = vector.multi_reduction <maximumf>, %3, %cst_9 [1] : vector<2x4x256xf32> to vector<2x256xf32>
    %10 = arith.maximumf %8, %9 : vector<2x256xf32>
    %c0_10 = arith.constant 0 : index
    %c0_11 = arith.constant 0 : index
    %11 = vector.load %arg6[%c0_10, %c0_11] : memref<2x256xf32, #tpu.memory_space<vmem>>, vector<2x256xf32>
    tpu.vector_store %arg6[%c0_10, %c0_11], %10 {strides = array<i32>} : memref<2x256xf32, #tpu.memory_space<vmem>>, vector<2x256xf32>,
    %c0_i32_12 = arith.constant 0 : i32
    %12 = arith.cmpi eq, %arg1, %c0_i32_12 : i32
    %13 = arith.extui %12 : i1 to i32
    %c0_i32_13 = arith.constant 0 : i32
    %14 = arith.cmpi ne, %13, %c0_i32_13 : i32
    scf.if %14 {
      %c0_14 = arith.constant 0 : index
      %c0_15 = arith.constant 0 : index
      %15 = vector.load %arg5[%c0_14, %c0_15] : memref<2x256xf32, #tpu.memory_space<vmem>>, vector<2x256xf32>
      %cst_16 = arith.constant 2.500000e-01 : f32
      %16 = vector.broadcast %cst_16 : f32 to vector<2x256xf32>
      %17 = arith.mulf %15, %16 : vector<2x256xf32>
      %c0_17 = arith.constant 0 : index
      %c0_18 = arith.constant 0 : index
      %18 = vector.load %arg6[%c0_17, %c0_18] : memref<2x256xf32, #tpu.memory_space<vmem>>, vector<2x256xf32>
      %19 = arith.addf %17, %18 : vector<2x256xf32>
      %cst_19 = arith.constant 0.000000e+00 : f32
      %20 = vector.broadcast %cst_19 : f32 to vector<2x51xf32>
      %c0_20 = arith.constant 0 : index
      %c0_21 = arith.constant 0 : index
      %21 = vector.load %arg7[%c0_20, %c0_21] : memref<2x358xf32, #tpu.memory_space<vmem>>, vector<2x51xf32>
      tpu.vector_store %arg7[%c0_20, %c0_21], %20 {strides = array<i32>} : memref<2x358xf32, #tpu.memory_space<vmem>>, vector<2x51xf32>,
      %cst_22 = arith.constant 0.000000e+00 : f32
      %22 = vector.broadcast %cst_22 : f32 to vector<2x51xf32>
      %c0_23 = arith.constant 0 : index
      %c307 = arith.constant 307 : index
      %23 = vector.load %arg7[%c0_23, %c307] : memref<2x358xf32, #tpu.memory_space<vmem>>, vector<2x51xf32>
      tpu.vector_store %arg7[%c0_23, %c307], %22 {strides = array<i32>} : memref<2x358xf32, #tpu.memory_space<vmem>>, vector<2x51xf32>,
      %c0_24 = arith.constant 0 : index
      %c51 = arith.constant 51 : index
      %24 = vector.load %arg7[%c0_24, %c51] : memref<2x358xf32, #tpu.memory_space<vmem>>, vector<2x256xf32>
      tpu.vector_store %arg7[%c0_24, %c51], %19 {strides = array<i32>} : memref<2x358xf32, #tpu.memory_space<vmem>>, vector<2x256xf32>,
      %25 = tpu.iota {dimensions = array<i32: 1>} : vector<2x256xi32>
      %c16_i32 = arith.constant 16 : i32
      %c0_i32_25 = arith.constant 0 : i32
      %26 = arith.cmpi eq, %c16_i32, %c0_i32_25 : i32
      %c1_i32 = arith.constant 1 : i32
      %27 = arith.select %26, %c1_i32, %c16_i32 : i32
      %28 = vector.broadcast %27 : i32 to vector<2x256xi32>
      %29 = arith.remsi %25, %28 : vector<2x256xi32>
      %c0_i32_26 = arith.constant 0 : i32
      %30 = vector.broadcast %c0_i32_26 : i32 to vector<2x256xi32>
      %31 = arith.cmpi ne, %29, %30 : vector<2x256xi32>
      %c0_i32_27 = arith.constant 0 : i32
      %32 = vector.broadcast %c0_i32_27 : i32 to vector<2x256xi32>
      %33 = arith.cmpi slt, %29, %32 : vector<2x256xi32>
      %c0_i32_28 = arith.constant 0 : i32
      %34 = arith.cmpi slt, %27, %c0_i32_28 : i32
      %35 = vector.broadcast %34 : i1 to vector<2x256xi1>
      %36 = vector.broadcast %35 : vector<2x256xi1> to vector<2x256xi1>
      %37 = arith.xori %33, %36 : vector<2x256xi1>
      %38 = arith.andi %37, %31 : vector<2x256xi1>
      %39 = vector.broadcast %27 : i32 to vector<2x256xi32>
      %40 = arith.addi %29, %39 : vector<2x256xi32>
      %41 = arith.select %38, %40, %29 : vector<2x256xi1>, vector<2x256xi32>
      %cst_29 = arith.constant 0.000000e+00 : f32
      %42 = vector.broadcast %cst_29 : f32 to vector<2x256xf32>
      %cst_30 = arith.constant 0.000000e+00 : f32
      %43 = vector.broadcast %cst_30 : f32 to vector<2x256xf32>
      %cst_31 = arith.constant 0.000000e+00 : f32
      %44 = vector.broadcast %cst_31 : f32 to vector<2x256xf32>
      %cst_32 = arith.constant 0.000000e+00 : f32
      %45 = vector.broadcast %cst_32 : f32 to vector<2x256xf32>
      %c0_33 = arith.constant 0 : index
      %c0_34 = arith.constant 0 : index
      %46 = vector.load %arg7[%c0_33, %c0_34] : memref<2x358xf32, #tpu.memory_space<vmem>>, vector<2x256xf32>
      %c0_35 = arith.constant 0 : index
      %47 = memref.load %arg2[%c0_35] : memref<49xf32, #tpu.memory_space<smem>>
      %48 = vector.broadcast %47 : f32 to vector<2x256xf32>
      %49 = arith.mulf %48, %46 : vector<2x256xf32>
      %50 = arith.addf %44, %49 : vector<2x256xf32>
      %c0_36 = arith.constant 0 : index
      %c16 = arith.constant 16 : index
      %51 = vector.load %arg7[%c0_36, %c16] : memref<2x358xf32, #tpu.memory_space<vmem>>, vector<2x256xf32>
      %c7 = arith.constant 7 : index
      %52 = memref.load %arg2[%c7] : memref<49xf32, #tpu.memory_space<smem>>
      %53 = vector.broadcast %52 : f32 to vector<2x256xf32>
      %54 = arith.mulf %53, %51 : vector<2x256xf32>
      %55 = arith.addf %45, %54 : vector<2x256xf32>
      %c0_37 = arith.constant 0 : index
      %c32 = arith.constant 32 : index
      %56 = vector.load %arg7[%c0_37, %c32] : memref<2x358xf32, #tpu.memory_space<vmem>>, vector<2x256xf32>
      %c14 = arith.constant 14 : index
      %57 = memref.load %arg2[%c14] : memref<49xf32, #tpu.memory_space<smem>>
      %58 = vector.broadcast %57 : f32 to vector<2x256xf32>
      %59 = arith.mulf %58, %56 : vector<2x256xf32>
      %60 = arith.addf %50, %59 : vector<2x256xf32>
      %c0_38 = arith.constant 0 : index
      %c48 = arith.constant 48 : index
      %61 = vector.load %arg7[%c0_38, %c48] : memref<2x358xf32, #tpu.memory_space<vmem>>, vector<2x256xf32>
      %c21 = arith.constant 21 : index
      %62 = memref.load %arg2[%c21] : memref<49xf32, #tpu.memory_space<smem>>
      %63 = vector.broadcast %62 : f32 to vector<2x256xf32>
      %64 = arith.mulf %63, %61 : vector<2x256xf32>
      %65 = arith.addf %55, %64 : vector<2x256xf32>
      %c0_39 = arith.constant 0 : index
      %c64 = arith.constant 64 : index
      %66 = vector.load %arg7[%c0_39, %c64] : memref<2x358xf32, #tpu.memory_space<vmem>>, vector<2x256xf32>
      %c28 = arith.constant 28 : index
      %67 = memref.load %arg2[%c28] : memref<49xf32, #tpu.memory_space<smem>>
      %68 = vector.broadcast %67 : f32 to vector<2x256xf32>
      %69 = arith.mulf %68, %66 : vector<2x256xf32>
      %70 = arith.addf %60, %69 : vector<2x256xf32>
      %c0_40 = arith.constant 0 : index
      %c80 = arith.constant 80 : index
      %71 = vector.load %arg7[%c0_40, %c80] : memref<2x358xf32, #tpu.memory_space<vmem>>, vector<2x256xf32>
      %c35 = arith.constant 35 : index
      %72 = memref.load %arg2[%c35] : memref<49xf32, #tpu.memory_space<smem>>
      %73 = vector.broadcast %72 : f32 to vector<2x256xf32>
      %74 = arith.mulf %73, %71 : vector<2x256xf32>
      %75 = arith.addf %65, %74 : vector<2x256xf32>
      %c0_41 = arith.constant 0 : index
      %c96 = arith.constant 96 : index
      %76 = vector.load %arg7[%c0_41, %c96] : memref<2x358xf32, #tpu.memory_space<vmem>>, vector<2x256xf32>
      %c42 = arith.constant 42 : index
      %77 = memref.load %arg2[%c42] : memref<49xf32, #tpu.memory_space<smem>>
      %78 = vector.broadcast %77 : f32 to vector<2x256xf32>
      %79 = arith.mulf %78, %76 : vector<2x256xf32>
      %80 = arith.addf %70, %79 : vector<2x256xf32>
      %81 = arith.addf %80, %75 : vector<2x256xf32>
      %c3_i32 = arith.constant 3 : i32
      %82 = vector.broadcast %c3_i32 : i32 to vector<2x256xi32>
      %83 = arith.cmpi sge, %41, %82 : vector<2x256xi32>
      %cst_42 = arith.constant 0.000000e+00 : f32
      %84 = vector.broadcast %cst_42 : f32 to vector<2x256xf32>
      %85 = arith.select %83, %81, %84 : vector<2x256xi1>, vector<2x256xf32>
      %86 = arith.addf %42, %85 : vector<2x256xf32>
      %cst_43 = arith.constant 0.000000e+00 : f32
      %87 = vector.broadcast %cst_43 : f32 to vector<2x256xf32>
      %cst_44 = arith.constant 0.000000e+00 : f32
      %88 = vector.broadcast %cst_44 : f32 to vector<2x256xf32>
      %c0_45 = arith.constant 0 : index
      %c1 = arith.constant 1 : index
      %89 = vector.load %arg7[%c0_45, %c1] : memref<2x358xf32, #tpu.memory_space<vmem>>, vector<2x256xf32>
      %c1_46 = arith.constant 1 : index
      %90 = memref.load %arg2[%c1_46] : memref<49xf32, #tpu.memory_space<smem>>
      %91 = vector.broadcast %90 : f32 to vector<2x256xf32>
      %92 = arith.mulf %91, %89 : vector<2x256xf32>
      %93 = arith.addf %87, %92 : vector<2x256xf32>
      %c0_47 = arith.constant 0 : index
      %c17 = arith.constant 17 : index
      %94 = vector.load %arg7[%c0_47, %c17] : memref<2x358xf32, #tpu.memory_space<vmem>>, vector<2x256xf32>
      %c8 = arith.constant 8 : index
      %95 = memref.load %arg2[%c8] : memref<49xf32, #tpu.memory_space<smem>>
      %96 = vector.broadcast %95 : f32 to vector<2x256xf32>
      %97 = arith.mulf %96, %94 : vector<2x256xf32>
      %98 = arith.addf %88, %97 : vector<2x256xf32>
      %c0_48 = arith.constant 0 : index
      %c33 = arith.constant 33 : index
      %99 = vector.load %arg7[%c0_48, %c33] : memref<2x358xf32, #tpu.memory_space<vmem>>, vector<2x256xf32>
      %c15 = arith.constant 15 : index
      %100 = memref.load %arg2[%c15] : memref<49xf32, #tpu.memory_space<smem>>
      %101 = vector.broadcast %100 : f32 to vector<2x256xf32>
      %102 = arith.mulf %101, %99 : vector<2x256xf32>
      %103 = arith.addf %93, %102 : vector<2x256xf32>
      %c0_49 = arith.constant 0 : index
      %c49 = arith.constant 49 : index
      %104 = vector.load %arg7[%c0_49, %c49] : memref<2x358xf32, #tpu.memory_space<vmem>>, vector<2x256xf32>
      %c22 = arith.constant 22 : index
      %105 = memref.load %arg2[%c22] : memref<49xf32, #tpu.memory_space<smem>>
      %106 = vector.broadcast %105 : f32 to vector<2x256xf32>
      %107 = arith.mulf %106, %104 : vector<2x256xf32>
      %108 = arith.addf %98, %107 : vector<2x256xf32>
      %c0_50 = arith.constant 0 : index
      %c65 = arith.constant 65 : index
      %109 = vector.load %arg7[%c0_50, %c65] : memref<2x358xf32, #tpu.memory_space<vmem>>, vector<2x256xf32>
      %c29 = arith.constant 29 : index
      %110 = memref.load %arg2[%c29] : memref<49xf32, #tpu.memory_space<smem>>
      %111 = vector.broadcast %110 : f32 to vector<2x256xf32>
      %112 = arith.mulf %111, %109 : vector<2x256xf32>
      %113 = arith.addf %103, %112 : vector<2x256xf32>
      %c0_51 = arith.constant 0 : index
      %c81 = arith.constant 81 : index
      %114 = vector.load %arg7[%c0_51, %c81] : memref<2x358xf32, #tpu.memory_space<vmem>>, vector<2x256xf32>
      %c36 = arith.constant 36 : index
      %115 = memref.load %arg2[%c36] : memref<49xf32, #tpu.memory_space<smem>>
      %116 = vector.broadcast %115 : f32 to vector<2x256xf32>
      %117 = arith.mulf %116, %114 : vector<2x256xf32>
      %118 = arith.addf %108, %117 : vector<2x256xf32>
      %c0_52 = arith.constant 0 : index
      %c97 = arith.constant 97 : index
      %119 = vector.load %arg7[%c0_52, %c97] : memref<2x358xf32, #tpu.memory_space<vmem>>, vector<2x256xf32>
      %c43 = arith.constant 43 : index
      %120 = memref.load %arg2[%c43] : memref<49xf32, #tpu.memory_space<smem>>
      %121 = vector.broadcast %120 : f32 to vector<2x256xf32>
      %122 = arith.mulf %121, %119 : vector<2x256xf32>
      %123 = arith.addf %113, %122 : vector<2x256xf32>
      %124 = arith.addf %123, %118 : vector<2x256xf32>
      %c2_i32 = arith.constant 2 : i32
      %125 = vector.broadcast %c2_i32 : i32 to vector<2x256xi32>
      %126 = arith.cmpi sge, %41, %125 : vector<2x256xi32>
      %cst_53 = arith.constant 0.000000e+00 : f32
      %127 = vector.broadcast %cst_53 : f32 to vector<2x256xf32>
      %128 = arith.select %126, %124, %127 : vector<2x256xi1>, vector<2x256xf32>
      %129 = arith.addf %43, %128 : vector<2x256xf32>
      %cst_54 = arith.constant 0.000000e+00 : f32
      %130 = vector.broadcast %cst_54 : f32 to vector<2x256xf32>
      %cst_55 = arith.constant 0.000000e+00 : f32
      %131 = vector.broadcast %cst_55 : f32 to vector<2x256xf32>
      %c0_56 = arith.constant 0 : index
      %c2 = arith.constant 2 : index
      %132 = vector.load %arg7[%c0_56, %c2] : memref<2x358xf32, #tpu.memory_space<vmem>>, vector<2x256xf32>
      %c2_57 = arith.constant 2 : index
      %133 = memref.load %arg2[%c2_57] : memref<49xf32, #tpu.memory_space<smem>>
      %134 = vector.broadcast %133 : f32 to vector<2x256xf32>
      %135 = arith.mulf %134, %132 : vector<2x256xf32>
      %136 = arith.addf %130, %135 : vector<2x256xf32>
      %c0_58 = arith.constant 0 : index
      %c18 = arith.constant 18 : index
      %137 = vector.load %arg7[%c0_58, %c18] : memref<2x358xf32, #tpu.memory_space<vmem>>, vector<2x256xf32>
      %c9 = arith.constant 9 : index
      %138 = memref.load %arg2[%c9] : memref<49xf32, #tpu.memory_space<smem>>
      %139 = vector.broadcast %138 : f32 to vector<2x256xf32>
      %140 = arith.mulf %139, %137 : vector<2x256xf32>
      %141 = arith.addf %131, %140 : vector<2x256xf32>
      %c0_59 = arith.constant 0 : index
      %c34 = arith.constant 34 : index
      %142 = vector.load %arg7[%c0_59, %c34] : memref<2x358xf32, #tpu.memory_space<vmem>>, vector<2x256xf32>
      %c16_60 = arith.constant 16 : index
      %143 = memref.load %arg2[%c16_60] : memref<49xf32, #tpu.memory_space<smem>>
      %144 = vector.broadcast %143 : f32 to vector<2x256xf32>
      %145 = arith.mulf %144, %142 : vector<2x256xf32>
      %146 = arith.addf %136, %145 : vector<2x256xf32>
      %c0_61 = arith.constant 0 : index
      %c50 = arith.constant 50 : index
      %147 = vector.load %arg7[%c0_61, %c50] : memref<2x358xf32, #tpu.memory_space<vmem>>, vector<2x256xf32>
      %c23 = arith.constant 23 : index
      %148 = memref.load %arg2[%c23] : memref<49xf32, #tpu.memory_space<smem>>
      %149 = vector.broadcast %148 : f32 to vector<2x256xf32>
      %150 = arith.mulf %149, %147 : vector<2x256xf32>
      %151 = arith.addf %141, %150 : vector<2x256xf32>
      %c0_62 = arith.constant 0 : index
      %c66 = arith.constant 66 : index
      %152 = vector.load %arg7[%c0_62, %c66] : memref<2x358xf32, #tpu.memory_space<vmem>>, vector<2x256xf32>
      %c30 = arith.constant 30 : index
      %153 = memref.load %arg2[%c30] : memref<49xf32, #tpu.memory_space<smem>>
      %154 = vector.broadcast %153 : f32 to vector<2x256xf32>
      %155 = arith.mulf %154, %152 : vector<2x256xf32>
      %156 = arith.addf %146, %155 : vector<2x256xf32>
      %c0_63 = arith.constant 0 : index
      %c82 = arith.constant 82 : index
      %157 = vector.load %arg7[%c0_63, %c82] : memref<2x358xf32, #tpu.memory_space<vmem>>, vector<2x256xf32>
      %c37 = arith.constant 37 : index
      %158 = memref.load %arg2[%c37] : memref<49xf32, #tpu.memory_space<smem>>
      %159 = vector.broadcast %158 : f32 to vector<2x256xf32>
      %160 = arith.mulf %159, %157 : vector<2x256xf32>
      %161 = arith.addf %151, %160 : vector<2x256xf32>
      %c0_64 = arith.constant 0 : index
      %c98 = arith.constant 98 : index
      %162 = vector.load %arg7[%c0_64, %c98] : memref<2x358xf32, #tpu.memory_space<vmem>>, vector<2x256xf32>
      %c44 = arith.constant 44 : index
      %163 = memref.load %arg2[%c44] : memref<49xf32, #tpu.memory_space<smem>>
      %164 = vector.broadcast %163 : f32 to vector<2x256xf32>
      %165 = arith.mulf %164, %162 : vector<2x256xf32>
      %166 = arith.addf %156, %165 : vector<2x256xf32>
      %167 = arith.addf %166, %161 : vector<2x256xf32>
      %c1_i32_65 = arith.constant 1 : i32
      %168 = vector.broadcast %c1_i32_65 : i32 to vector<2x256xi32>
      %169 = arith.cmpi sge, %41, %168 : vector<2x256xi32>
      %cst_66 = arith.constant 0.000000e+00 : f32
      %170 = vector.broadcast %cst_66 : f32 to vector<2x256xf32>
      %171 = arith.select %169, %167, %170 : vector<2x256xi1>, vector<2x256xf32>
      %172 = arith.addf %86, %171 : vector<2x256xf32>
      %cst_67 = arith.constant 0.000000e+00 : f32
      %173 = vector.broadcast %cst_67 : f32 to vector<2x256xf32>
      %cst_68 = arith.constant 0.000000e+00 : f32
      %174 = vector.broadcast %cst_68 : f32 to vector<2x256xf32>
      %c0_69 = arith.constant 0 : index
      %c3 = arith.constant 3 : index
      %175 = vector.load %arg7[%c0_69, %c3] : memref<2x358xf32, #tpu.memory_space<vmem>>, vector<2x256xf32>
      %c3_70 = arith.constant 3 : index
      %176 = memref.load %arg2[%c3_70] : memref<49xf32, #tpu.memory_space<smem>>
      %177 = vector.broadcast %176 : f32 to vector<2x256xf32>
      %178 = arith.mulf %177, %175 : vector<2x256xf32>
      %179 = arith.addf %173, %178 : vector<2x256xf32>
      %c0_71 = arith.constant 0 : index
      %c19 = arith.constant 19 : index
      %180 = vector.load %arg7[%c0_71, %c19] : memref<2x358xf32, #tpu.memory_space<vmem>>, vector<2x256xf32>
      %c10 = arith.constant 10 : index
      %181 = memref.load %arg2[%c10] : memref<49xf32, #tpu.memory_space<smem>>
      %182 = vector.broadcast %181 : f32 to vector<2x256xf32>
      %183 = arith.mulf %182, %180 : vector<2x256xf32>
      %184 = arith.addf %174, %183 : vector<2x256xf32>
      %c0_72 = arith.constant 0 : index
      %c35_73 = arith.constant 35 : index
      %185 = vector.load %arg7[%c0_72, %c35_73] : memref<2x358xf32, #tpu.memory_space<vmem>>, vector<2x256xf32>
      %c17_74 = arith.constant 17 : index
      %186 = memref.load %arg2[%c17_74] : memref<49xf32, #tpu.memory_space<smem>>
      %187 = vector.broadcast %186 : f32 to vector<2x256xf32>
      %188 = arith.mulf %187, %185 : vector<2x256xf32>
      %189 = arith.addf %179, %188 : vector<2x256xf32>
      %c0_75 = arith.constant 0 : index
      %c51_76 = arith.constant 51 : index
      %190 = vector.load %arg7[%c0_75, %c51_76] : memref<2x358xf32, #tpu.memory_space<vmem>>, vector<2x256xf32>
      %c24 = arith.constant 24 : index
      %191 = memref.load %arg2[%c24] : memref<49xf32, #tpu.memory_space<smem>>
      %192 = vector.broadcast %191 : f32 to vector<2x256xf32>
      %193 = arith.mulf %192, %190 : vector<2x256xf32>
      %194 = arith.addf %184, %193 : vector<2x256xf32>
      %c0_77 = arith.constant 0 : index
      %c67 = arith.constant 67 : index
      %195 = vector.load %arg7[%c0_77, %c67] : memref<2x358xf32, #tpu.memory_space<vmem>>, vector<2x256xf32>
      %c31 = arith.constant 31 : index
      %196 = memref.load %arg2[%c31] : memref<49xf32, #tpu.memory_space<smem>>
      %197 = vector.broadcast %196 : f32 to vector<2x256xf32>
      %198 = arith.mulf %197, %195 : vector<2x256xf32>
      %199 = arith.addf %189, %198 : vector<2x256xf32>
      %c0_78 = arith.constant 0 : index
      %c83 = arith.constant 83 : index
      %200 = vector.load %arg7[%c0_78, %c83] : memref<2x358xf32, #tpu.memory_space<vmem>>, vector<2x256xf32>
      %c38 = arith.constant 38 : index
      %201 = memref.load %arg2[%c38] : memref<49xf32, #tpu.memory_space<smem>>
      %202 = vector.broadcast %201 : f32 to vector<2x256xf32>
      %203 = arith.mulf %202, %200 : vector<2x256xf32>
      %204 = arith.addf %194, %203 : vector<2x256xf32>
      %c0_79 = arith.constant 0 : index
      %c99 = arith.constant 99 : index
      %205 = vector.load %arg7[%c0_79, %c99] : memref<2x358xf32, #tpu.memory_space<vmem>>, vector<2x256xf32>
      %c45 = arith.constant 45 : index
      %206 = memref.load %arg2[%c45] : memref<49xf32, #tpu.memory_space<smem>>
      %207 = vector.broadcast %206 : f32 to vector<2x256xf32>
      %208 = arith.mulf %207, %205 : vector<2x256xf32>
      %209 = arith.addf %199, %208 : vector<2x256xf32>
      %210 = arith.addf %209, %204 : vector<2x256xf32>
      %211 = arith.addf %129, %210 : vector<2x256xf32>
      %cst_80 = arith.constant 0.000000e+00 : f32
      %212 = vector.broadcast %cst_80 : f32 to vector<2x256xf32>
      %cst_81 = arith.constant 0.000000e+00 : f32
      %213 = vector.broadcast %cst_81 : f32 to vector<2x256xf32>
      %c0_82 = arith.constant 0 : index
      %c4 = arith.constant 4 : index
      %214 = vector.load %arg7[%c0_82, %c4] : memref<2x358xf32, #tpu.memory_space<vmem>>, vector<2x256xf32>
      %c4_83 = arith.constant 4 : index
      %215 = memref.load %arg2[%c4_83] : memref<49xf32, #tpu.memory_space<smem>>
      %216 = vector.broadcast %215 : f32 to vector<2x256xf32>
      %217 = arith.mulf %216, %214 : vector<2x256xf32>
      %218 = arith.addf %212, %217 : vector<2x256xf32>
      %c0_84 = arith.constant 0 : index
      %c20 = arith.constant 20 : index
      %219 = vector.load %arg7[%c0_84, %c20] : memref<2x358xf32, #tpu.memory_space<vmem>>, vector<2x256xf32>
      %c11 = arith.constant 11 : index
      %220 = memref.load %arg2[%c11] : memref<49xf32, #tpu.memory_space<smem>>
      %221 = vector.broadcast %220 : f32 to vector<2x256xf32>
      %222 = arith.mulf %221, %219 : vector<2x256xf32>
      %223 = arith.addf %213, %222 : vector<2x256xf32>
      %c0_85 = arith.constant 0 : index
      %c36_86 = arith.constant 36 : index
      %224 = vector.load %arg7[%c0_85, %c36_86] : memref<2x358xf32, #tpu.memory_space<vmem>>, vector<2x256xf32>
      %c18_87 = arith.constant 18 : index
      %225 = memref.load %arg2[%c18_87] : memref<49xf32, #tpu.memory_space<smem>>
      %226 = vector.broadcast %225 : f32 to vector<2x256xf32>
      %227 = arith.mulf %226, %224 : vector<2x256xf32>
      %228 = arith.addf %218, %227 : vector<2x256xf32>
      %c0_88 = arith.constant 0 : index
      %c52 = arith.constant 52 : index
      %229 = vector.load %arg7[%c0_88, %c52] : memref<2x358xf32, #tpu.memory_space<vmem>>, vector<2x256xf32>
      %c25 = arith.constant 25 : index
      %230 = memref.load %arg2[%c25] : memref<49xf32, #tpu.memory_space<smem>>
      %231 = vector.broadcast %230 : f32 to vector<2x256xf32>
      %232 = arith.mulf %231, %229 : vector<2x256xf32>
      %233 = arith.addf %223, %232 : vector<2x256xf32>
      %c0_89 = arith.constant 0 : index
      %c68 = arith.constant 68 : index
      %234 = vector.load %arg7[%c0_89, %c68] : memref<2x358xf32, #tpu.memory_space<vmem>>, vector<2x256xf32>
      %c32_90 = arith.constant 32 : index
      %235 = memref.load %arg2[%c32_90] : memref<49xf32, #tpu.memory_space<smem>>
      %236 = vector.broadcast %235 : f32 to vector<2x256xf32>
      %237 = arith.mulf %236, %234 : vector<2x256xf32>
      %238 = arith.addf %228, %237 : vector<2x256xf32>
      %c0_91 = arith.constant 0 : index
      %c84 = arith.constant 84 : index
      %239 = vector.load %arg7[%c0_91, %c84] : memref<2x358xf32, #tpu.memory_space<vmem>>, vector<2x256xf32>
      %c39 = arith.constant 39 : index
      %240 = memref.load %arg2[%c39] : memref<49xf32, #tpu.memory_space<smem>>
      %241 = vector.broadcast %240 : f32 to vector<2x256xf32>
      %242 = arith.mulf %241, %239 : vector<2x256xf32>
      %243 = arith.addf %233, %242 : vector<2x256xf32>
      %c0_92 = arith.constant 0 : index
      %c100 = arith.constant 100 : index
      %244 = vector.load %arg7[%c0_92, %c100] : memref<2x358xf32, #tpu.memory_space<vmem>>, vector<2x256xf32>
      %c46 = arith.constant 46 : index
      %245 = memref.load %arg2[%c46] : memref<49xf32, #tpu.memory_space<smem>>
      %246 = vector.broadcast %245 : f32 to vector<2x256xf32>
      %247 = arith.mulf %246, %244 : vector<2x256xf32>
      %248 = arith.addf %238, %247 : vector<2x256xf32>
      %249 = arith.addf %248, %243 : vector<2x256xf32>
      %c15_i32 = arith.constant 15 : i32
      %250 = vector.broadcast %c15_i32 : i32 to vector<2x256xi32>
      %251 = arith.cmpi slt, %41, %250 : vector<2x256xi32>
      %cst_93 = arith.constant 0.000000e+00 : f32
      %252 = vector.broadcast %cst_93 : f32 to vector<2x256xf32>
      %253 = arith.select %251, %249, %252 : vector<2x256xi1>, vector<2x256xf32>
      %254 = arith.addf %172, %253 : vector<2x256xf32>
      %cst_94 = arith.constant 0.000000e+00 : f32
      %255 = vector.broadcast %cst_94 : f32 to vector<2x256xf32>
      %cst_95 = arith.constant 0.000000e+00 : f32
      %256 = vector.broadcast %cst_95 : f32 to vector<2x256xf32>
      %c0_96 = arith.constant 0 : index
      %c5 = arith.constant 5 : index
      %257 = vector.load %arg7[%c0_96, %c5] : memref<2x358xf32, #tpu.memory_space<vmem>>, vector<2x256xf32>
      %c5_97 = arith.constant 5 : index
      %258 = memref.load %arg2[%c5_97] : memref<49xf32, #tpu.memory_space<smem>>
      %259 = vector.broadcast %258 : f32 to vector<2x256xf32>
      %260 = arith.mulf %259, %257 : vector<2x256xf32>
      %261 = arith.addf %255, %260 : vector<2x256xf32>
      %c0_98 = arith.constant 0 : index
      %c21_99 = arith.constant 21 : index
      %262 = vector.load %arg7[%c0_98, %c21_99] : memref<2x358xf32, #tpu.memory_space<vmem>>, vector<2x256xf32>
      %c12 = arith.constant 12 : index
      %263 = memref.load %arg2[%c12] : memref<49xf32, #tpu.memory_space<smem>>
      %264 = vector.broadcast %263 : f32 to vector<2x256xf32>
      %265 = arith.mulf %264, %262 : vector<2x256xf32>
      %266 = arith.addf %256, %265 : vector<2x256xf32>
      %c0_100 = arith.constant 0 : index
      %c37_101 = arith.constant 37 : index
      %267 = vector.load %arg7[%c0_100, %c37_101] : memref<2x358xf32, #tpu.memory_space<vmem>>, vector<2x256xf32>
      %c19_102 = arith.constant 19 : index
      %268 = memref.load %arg2[%c19_102] : memref<49xf32, #tpu.memory_space<smem>>
      %269 = vector.broadcast %268 : f32 to vector<2x256xf32>
      %270 = arith.mulf %269, %267 : vector<2x256xf32>
      %271 = arith.addf %261, %270 : vector<2x256xf32>
      %c0_103 = arith.constant 0 : index
      %c53 = arith.constant 53 : index
      %272 = vector.load %arg7[%c0_103, %c53] : memref<2x358xf32, #tpu.memory_space<vmem>>, vector<2x256xf32>
      %c26 = arith.constant 26 : index
      %273 = memref.load %arg2[%c26] : memref<49xf32, #tpu.memory_space<smem>>
      %274 = vector.broadcast %273 : f32 to vector<2x256xf32>
      %275 = arith.mulf %274, %272 : vector<2x256xf32>
      %276 = arith.addf %266, %275 : vector<2x256xf32>
      %c0_104 = arith.constant 0 : index
      %c69 = arith.constant 69 : index
      %277 = vector.load %arg7[%c0_104, %c69] : memref<2x358xf32, #tpu.memory_space<vmem>>, vector<2x256xf32>
      %c33_105 = arith.constant 33 : index
      %278 = memref.load %arg2[%c33_105] : memref<49xf32, #tpu.memory_space<smem>>
      %279 = vector.broadcast %278 : f32 to vector<2x256xf32>
      %280 = arith.mulf %279, %277 : vector<2x256xf32>
      %281 = arith.addf %271, %280 : vector<2x256xf32>
      %c0_106 = arith.constant 0 : index
      %c85 = arith.constant 85 : index
      %282 = vector.load %arg7[%c0_106, %c85] : memref<2x358xf32, #tpu.memory_space<vmem>>, vector<2x256xf32>
      %c40 = arith.constant 40 : index
      %283 = memref.load %arg2[%c40] : memref<49xf32, #tpu.memory_space<smem>>
      %284 = vector.broadcast %283 : f32 to vector<2x256xf32>
      %285 = arith.mulf %284, %282 : vector<2x256xf32>
      %286 = arith.addf %276, %285 : vector<2x256xf32>
      %c0_107 = arith.constant 0 : index
      %c101 = arith.constant 101 : index
      %287 = vector.load %arg7[%c0_107, %c101] : memref<2x358xf32, #tpu.memory_space<vmem>>, vector<2x256xf32>
      %c47 = arith.constant 47 : index
      %288 = memref.load %arg2[%c47] : memref<49xf32, #tpu.memory_space<smem>>
      %289 = vector.broadcast %288 : f32 to vector<2x256xf32>
      %290 = arith.mulf %289, %287 : vector<2x256xf32>
      %291 = arith.addf %281, %290 : vector<2x256xf32>
      %292 = arith.addf %291, %286 : vector<2x256xf32>
      %c14_i32 = arith.constant 14 : i32
      %293 = vector.broadcast %c14_i32 : i32 to vector<2x256xi32>
      %294 = arith.cmpi slt, %41, %293 : vector<2x256xi32>
      %cst_108 = arith.constant 0.000000e+00 : f32
      %295 = vector.broadcast %cst_108 : f32 to vector<2x256xf32>
      %296 = arith.select %294, %292, %295 : vector<2x256xi1>, vector<2x256xf32>
      %297 = arith.addf %211, %296 : vector<2x256xf32>
      %cst_109 = arith.constant 0.000000e+00 : f32
      %298 = vector.broadcast %cst_109 : f32 to vector<2x256xf32>
      %cst_110 = arith.constant 0.000000e+00 : f32
      %299 = vector.broadcast %cst_110 : f32 to vector<2x256xf32>
      %c0_111 = arith.constant 0 : index
      %c6 = arith.constant 6 : index
      %300 = vector.load %arg7[%c0_111, %c6] : memref<2x358xf32, #tpu.memory_space<vmem>>, vector<2x256xf32>
      %c6_112 = arith.constant 6 : index
      %301 = memref.load %arg2[%c6_112] : memref<49xf32, #tpu.memory_space<smem>>
      %302 = vector.broadcast %301 : f32 to vector<2x256xf32>
      %303 = arith.mulf %302, %300 : vector<2x256xf32>
      %304 = arith.addf %298, %303 : vector<2x256xf32>
      %c0_113 = arith.constant 0 : index
      %c22_114 = arith.constant 22 : index
      %305 = vector.load %arg7[%c0_113, %c22_114] : memref<2x358xf32, #tpu.memory_space<vmem>>, vector<2x256xf32>
      %c13 = arith.constant 13 : index
      %306 = memref.load %arg2[%c13] : memref<49xf32, #tpu.memory_space<smem>>
      %307 = vector.broadcast %306 : f32 to vector<2x256xf32>
      %308 = arith.mulf %307, %305 : vector<2x256xf32>
      %309 = arith.addf %299, %308 : vector<2x256xf32>
      %c0_115 = arith.constant 0 : index
      %c38_116 = arith.constant 38 : index
      %310 = vector.load %arg7[%c0_115, %c38_116] : memref<2x358xf32, #tpu.memory_space<vmem>>, vector<2x256xf32>
      %c20_117 = arith.constant 20 : index
      %311 = memref.load %arg2[%c20_117] : memref<49xf32, #tpu.memory_space<smem>>
      %312 = vector.broadcast %311 : f32 to vector<2x256xf32>
      %313 = arith.mulf %312, %310 : vector<2x256xf32>
      %314 = arith.addf %304, %313 : vector<2x256xf32>
      %c0_118 = arith.constant 0 : index
      %c54 = arith.constant 54 : index
      %315 = vector.load %arg7[%c0_118, %c54] : memref<2x358xf32, #tpu.memory_space<vmem>>, vector<2x256xf32>
      %c27 = arith.constant 27 : index
      %316 = memref.load %arg2[%c27] : memref<49xf32, #tpu.memory_space<smem>>
      %317 = vector.broadcast %316 : f32 to vector<2x256xf32>
      %318 = arith.mulf %317, %315 : vector<2x256xf32>
      %319 = arith.addf %309, %318 : vector<2x256xf32>
      %c0_119 = arith.constant 0 : index
      %c70 = arith.constant 70 : index
      %320 = vector.load %arg7[%c0_119, %c70] : memref<2x358xf32, #tpu.memory_space<vmem>>, vector<2x256xf32>
      %c34_120 = arith.constant 34 : index
      %321 = memref.load %arg2[%c34_120] : memref<49xf32, #tpu.memory_space<smem>>
      %322 = vector.broadcast %321 : f32 to vector<2x256xf32>
      %323 = arith.mulf %322, %320 : vector<2x256xf32>
      %324 = arith.addf %314, %323 : vector<2x256xf32>
      %c0_121 = arith.constant 0 : index
      %c86 = arith.constant 86 : index
      %325 = vector.load %arg7[%c0_121, %c86] : memref<2x358xf32, #tpu.memory_space<vmem>>, vector<2x256xf32>
      %c41 = arith.constant 41 : index
      %326 = memref.load %arg2[%c41] : memref<49xf32, #tpu.memory_space<smem>>
      %327 = vector.broadcast %326 : f32 to vector<2x256xf32>
      %328 = arith.mulf %327, %325 : vector<2x256xf32>
      %329 = arith.addf %319, %328 : vector<2x256xf32>
      %c0_122 = arith.constant 0 : index
      %c102 = arith.constant 102 : index
      %330 = vector.load %arg7[%c0_122, %c102] : memref<2x358xf32, #tpu.memory_space<vmem>>, vector<2x256xf32>
      %c48_123 = arith.constant 48 : index
      %331 = memref.load %arg2[%c48_123] : memref<49xf32, #tpu.memory_space<smem>>
      %332 = vector.broadcast %331 : f32 to vector<2x256xf32>
      %333 = arith.mulf %332, %330 : vector<2x256xf32>
      %334 = arith.addf %324, %333 : vector<2x256xf32>
      %335 = arith.addf %334, %329 : vector<2x256xf32>
      %c13_i32 = arith.constant 13 : i32
      %336 = vector.broadcast %c13_i32 : i32 to vector<2x256xi32>
      %337 = arith.cmpi slt, %41, %336 : vector<2x256xi32>
      %cst_124 = arith.constant 0.000000e+00 : f32
      %338 = vector.broadcast %cst_124 : f32 to vector<2x256xf32>
      %339 = arith.select %337, %335, %338 : vector<2x256xi1>, vector<2x256xf32>
      %340 = arith.addf %254, %339 : vector<2x256xf32>
      %341 = arith.addf %340, %297 : vector<2x256xf32>
      %342 = arith.negf %341 : vector<2x256xf32>
      %343 = math.exp %342 : vector<2x256xf32>
      %cst_125 = arith.constant 1.000000e+00 : f32
      %344 = vector.broadcast %cst_125 : f32 to vector<2x256xf32>
      %345 = arith.addf %344, %343 : vector<2x256xf32>
      %346 = arith.divf %344, %345 : vector<2x256xf32>
      %c0_126 = arith.constant 0 : index
      %c0_127 = arith.constant 0 : index
      %347 = vector.load %arg4[%c0_126, %c0_127] : memref<2x256xf32, #tpu.memory_space<vmem>>, vector<2x256xf32>
      tpu.vector_store %arg4[%c0_126, %c0_127], %346 {strides = array<i32>} : memref<2x256xf32, #tpu.memory_space<vmem>>, vector<2x256xf32>,
    } else {
    }
    return
  }
  func.func @transform_0(%arg0: i32, %arg1: i32) -> i32 {
    %c0_i32 = arith.constant 0 : i32
    %c0_i32_0 = arith.constant 0 : i32
    return %c0_i32 : i32
  }
  func.func @transform_1(%arg0: i32, %arg1: i32) -> (i32, i32, i32) {
    %c0_i32 = arith.constant 0 : i32
    %c0_i32_0 = arith.constant 0 : i32
    return %arg0, %arg1, %c0_i32 : i32, i32, i32
  }
  func.func @transform_2(%arg0: i32, %arg1: i32) -> (i32, i32) {
    %c0_i32 = arith.constant 0 : i32
    %c0_i32_0 = arith.constant 0 : i32
    return %arg0, %c0_i32 : i32, i32
  }
}

</mosaic_0001>

<bundles_post_ra>
// kernel: tpu_custom_call.1
= control target key start
LH: loop header
LB: loop body
LE: loop exit
PB: predicated region body
PF: predicated region fallthrough
CT: control target
= control target key end

     0   :  { %7 = vsyncpa [#allocation8], 0  ;;  %s1315_s0 = inlined_call_operand.hbm [shape: f32[49], index: 0, kind: input, shape index: {}]   ;;  %s1316_s1 = inlined_call_operand.hbm [shape: f32[2,4,256], index: 1, kind: input, shape index: {}]   ;;  %s1317_s2 = inlined_call_operand.hbm [shape: f32[2,256], index: 2, kind: output, shape index: {}]  }
   0x1   :  { %8 = vsyncpa [#allocation6], 0 }
   0x2   :  { %9 = vsyncpa [#allocation7], 0  ;;  %s15_s11 = sshll.u32 %s1315_s0, 4  ;;  %s23_s14 = sshll.u32 %s1316_s1, 4  ;;  %s16_s11 = int_to_ptr.hbm [resolvable:$true] %s15_s11  ;;  %s24_s14 = int_to_ptr.hbm [resolvable:$true] %s23_s14 }
   0x3   :  { %s1039_s15 = smov [#allocation5]   ;;  %s1040_s16 = smov [#allocation9]  }
   0x4   :  { %18 = dma.hbm_to_smem %s16_s11, 16, %s1039_s15, [#allocation8]  }
   0x5   :  { %s25_s17 = sshll.u32 %s1040_s16, 4  ;;  %s1041_s18 = smov 128   ;;  %s26_s17 = int_to_ptr.vmem [resolvable:$true] %s25_s17 }
   0x6   :  { %s1042_s19 = smov 8  }
   0x7   :  { %31 = dma.hbm_to_vmem [thread:$0]  %s24_s14, 256, %s26_s17, [#allocation6], %s1041_s18, %s1041_s18, %s1042_s19  }
   0x8   :  { %1033 = dma.done.wait [#allocation8], 16  }
   0x9   :  { %1034 = vsyncadd [#allocation8], 4294967280 }
   0xa   :  { %1035 = dma.done.wait [#allocation6], 256  }
   0xb   :  { %1036 = vsyncadd [#allocation6], 4294967040 }
   0xc   :  { %40 = sfence }
   0xd   :  { %v47_v0 = vld [vmem:[#allocation9] sm:$0xff]  ;;  %v1043_v1 = vmov 0.0   ;;  %v48_v2 = vld [vmem:[#allocation9 + $0x8] sm:$0xff]  ;;  %v1044_v3 = vmov -inf   ;;  %vm63_vm0 = vcmask 1043456   ;;  %vm98_vm1 = vcmask 1041408  }
   0xe   :  { %45 = vst [vmem:[#allocation2] sm:$0xf] %v1043_v1  ;;  %vm106_vm2 = vcmask 1041409   ;;  %vm108_vm3 = vcmask 1043459   ;;  %vm182_vm4 = vcmask 410624   ;;  %vm184_vm5 = vcmask 828824  }
   0xf   :  { %46 = vst [vmem:[#allocation3] sm:$0xf] %v1044_v3  ;;  %vm110_vm6 = vcmask 1045509   ;;  %vm112_vm7 = vcmask 1047559   ;;  %s1045_s0 = smov 51   ;;  %vm193_vm8 = vcmask 1041816  }
  0x10   :  { %52 = vst [vmem:[#allocation1] ss:$2 sm:$0xff] %v47_v0  ;;  %vm194_vm9 = vcmask 1043458   ;;  %vm196_vm11 = vcmask 414724   ;;  %s908_s1 = sld [smem:[#allocation5 + $0x24]]  ;;  %vm190_vm12 = vcmask 416768  }
  0x11   :  { %56 = vst [vmem:[#allocation1 + $0x10] ss:$2 sm:$0xff] %v48_v2  ;;  %vm195_vm10 = vmor %vm194_vm9, %vm193_vm8  ;;  %s901_s20 = sld [smem:[#allocation5 + $0x23]]  ;;  %s1046_s25 = smov 64   ;;  %vm243_vm14 = vcmask 785408   ;;  %vm264_vm15 = vcmask 523264  }
  0x12   :  { %183 = vst.msk [vmem:[#allocation4] sm:$0x3] %vm182_vm4, %v1043_v1  ;;  %vm197_vm13 = vmor %vm196_vm11, %vm195_vm10  ;;  %s899_s21 = sld [smem:[#allocation5 + $0x15]]  ;;  %s1047_s26 = smov 96   ;;  %vm648_vm4 = vcmask 1014784   ;;  %vm562_vm9 = vcmask 1022976  }
  0x13   :  { %185 = vst.msk [vmem:[#allocation4 + $0x4] sm:$0x3] %vm184_vm5, %v1043_v1  ;;  %s913_s22 = sld [smem:[#allocation5 + $0x17]]  ;;  %s1048_s11 = smov 32  }
  0x14   :  { %s906_s23 = sld [smem:[#allocation5 + $0x16]] }
  0x15   :  { %s915_s24 = sld [smem:[#allocation5 + $0x25]] }
  0x16   :  { %s922_s27 = sld [smem:[#allocation5 + $0x26]] }
  0x17   :  { %v53_v4 = vld.sshfl [vmem:[#allocation1] sm:$0xff pattern:$0x75316420]  ;;  %v54_v5 = vld.sshfl [vmem:[#allocation1 + $0x8] sm:$0xff pattern:$0x75316420] }
  0x18   :  { %v57_v6 = vld.sshfl [vmem:[#allocation1 + $0x10] sm:$0xff pattern:$0x75316420]  ;;  %v58_v7 = vld.sshfl [vmem:[#allocation1 + $0x18] sm:$0xff pattern:$0x75316420] }
  0x19   :  { %v64_v8 = vsel %vm63_vm0, %v53_v4, 0.0  ;;  %v71_v9 = vsel %vm63_vm0, %v54_v5, 0.0  ;;  %v78_v10 = vsel %vm63_vm0, %v57_v6, 0.0  ;;  %v85_v11 = vsel %vm63_vm0, %v58_v7, 0.0  ;;  %118 = vst [vmem:[#allocation1] ss:$2 sm:$0xff] %v47_v0 }
  0x1a   :  { %v65_v12 = vrot.slane %v64_v8, 4  ;;  %v72_v13 = vrot.slane %v71_v9, 4  ;;  %v79_v14 = vrot.slane %v78_v10, 4  ;;  %v86_v15 = vrot.slane %v85_v11, 4  ;;  %122 = vst [vmem:[#allocation1 + $0x10] ss:$2 sm:$0xff] %v48_v2 }
  0x1b   :  { %v49_v2 = vld [vmem:[#allocation2] sm:$0xf]  ;;  %s920_s28 = sld [smem:[#allocation5 + $0x18]] }
  0x1c   :  { %v66_v16 = vadd.f32 %v65_v12, %v64_v8  ;;  %v73_v17 = vadd.f32 %v72_v13, %v71_v9  ;;  %v80_v18 = vadd.f32 %v79_v14, %v78_v10  ;;  %v87_v19 = vadd.f32 %v86_v15, %v85_v11  ;;  %s927_s29 = sld [smem:[#allocation5 + $0x19]] }
  0x1d   :  { %s929_s30 = sld [smem:[#allocation5 + $0x27]] }
  0x1e   :  { %v67_v20 = vrot.slane %v66_v16, 2  ;;  %v74_v21 = vrot.slane %v73_v17, 2  ;;  %v81_v22 = vrot.slane %v80_v18, 2  ;;  %v88_v23 = vrot.slane %v87_v19, 2  ;;  %s898_s3 = sld [smem:[#allocation5 + $0xe]] }
  0x1f   :  { %s934_s4 = sld [smem:[#allocation5 + $0x1a]] }
  0x20   :  { %v68_v24 = vadd.f32 %v67_v20, %v66_v16  ;;  %v75_v25 = vadd.f32 %v74_v21, %v73_v17  ;;  %v82_v26 = vadd.f32 %v81_v22, %v80_v18  ;;  %v89_v27 = vadd.f32 %v88_v23, %v87_v19  ;;  %v119_v28 = vld.sshfl [vmem:[#allocation1] sm:$0xff pattern:$0x75316420]  ;;  %v120_v29 = vld.sshfl [vmem:[#allocation1 + $0x8] sm:$0xff pattern:$0x75316420] }
  0x21   :  { %v123_v30 = vld.sshfl [vmem:[#allocation1 + $0x10] sm:$0xff pattern:$0x75316420]  ;;  %v124_v31 = vld.sshfl [vmem:[#allocation1 + $0x18] sm:$0xff pattern:$0x75316420] }
  0x22   :  { %v69_v32 = vrot.slane %v68_v24, 1  ;;  %v76_v33 = vrot.slane %v75_v25, 1  ;;  %v83_v34 = vrot.slane %v82_v26, 1  ;;  %v90_v35 = vrot.slane %v89_v27, 1  ;;  %v117_v21 = vld [vmem:[#allocation3] sm:$0xf] }
  0x23   :  { %v129_v36 = vsel %vm63_vm0, %v119_v28, -inf  ;;  %v136_v37 = vsel %vm63_vm0, %v120_v29, -inf  ;;  %v143_v38 = vsel %vm63_vm0, %v123_v30, -inf  ;;  %v150_v39 = vsel %vm63_vm0, %v124_v31, -inf  ;;  %s900_s5 = sld [smem:[#allocation5 + $0x1c]] }
  0x24   :  { %v70_v40 = vadd.f32 %v69_v32, %v68_v24  ;;  %v77_v41 = vadd.f32 %v76_v33, %v75_v25  ;;  %v84_v42 = vadd.f32 %v83_v34, %v82_v26  ;;  %v91_v43 = vadd.f32 %v90_v35, %v89_v27  ;;  %s936_s6 = sld [smem:[#allocation5 + $0x28]] }
  0x25   :  { %v130_v44 = vrot.slane %v129_v36, 4  ;;  %v137_v45 = vrot.slane %v136_v37, 4  ;;  %v144_v46 = vrot.slane %v143_v38, 4  ;;  %v151_v47 = vrot.slane %v150_v39, 4  ;;  %s902_s7 = sld [smem:[#allocation5 + $0x2a]] }
  0x26   :  { %v96_v48 = vrot.slane %v77_v41, 6  ;;  %v97_v49 = vrot.slane %v91_v43, 6  ;;  %v349_v33 = vstv %s908_s1  ;;  %v269_v34 = vstv %s901_s20  ;;  %s907_s8 = sld [smem:[#allocation5 + $0x1d]] }
  0x27   :  { %v131_v50 = vmax.f32 %v129_v36, %v130_v44  ;;  %v138_v51 = vmax.f32 %v136_v37, %v137_v45  ;;  %v145_v52 = vmax.f32 %v143_v38, %v144_v46  ;;  %v152_v53 = vmax.f32 %v150_v39, %v151_v47  ;;  %s905_s9 = sld [smem:[#allocation5 + $0xf]] }
  0x28   :  { %v99_v54 = vsel %vm98_vm1, %v70_v40, %v96_v48  ;;  %v100_v55 = vsel %vm98_vm1, %v84_v42, %v97_v49  ;;  %v248_v35 = vstv %s899_s21  ;;  %v417_v42 = vstv %s913_s22  ;;  %s941_s10 = sld [smem:[#allocation5 + $0x1b]] }
  0x29   :  { %v105_v56 = vrot.slane %v100_v55, 7  ;;  %v132_v57 = vrot.slane %v131_v50, 2  ;;  %v139_v58 = vrot.slane %v138_v51, 2  ;;  %v146_v59 = vrot.slane %v145_v52, 2  ;;  %s916_s12 = sld [smem:[#allocation5 + $0x2c]] }
  0x2a   :  { %v153_v60 = vrot.slane %v152_v53, 2  ;;  %v329_v43 = vstv %s906_s23  ;;  %v437_v44 = vstv %s915_s24  ;;  %v525_v49 = vstv %s922_s27  ;;  %s943_s13 = sld [smem:[#allocation5 + $0x29]]  ;;  %s1049_s23 = smov 112  }
  0x2b   :  { %v107_v61 = vsel %vm106_vm2, %v105_v56, %v99_v54  ;;  %v133_v62 = vmax.f32 %v131_v50, %v132_v57  ;;  %v140_v63 = vmax.f32 %v138_v51, %v139_v58  ;;  %v147_v0 = vmax.f32 %v145_v52, %v146_v59  ;;  %s909_s14 = sld [smem:[#allocation5 + $0x2b]] }
  0x2c   :  { %v109_v3 = vsel %vm108_vm3, %v105_v56, %v107_v61  ;;  %v154_v4 = vmax.f32 %v152_v53, %v153_v60  ;;  %v505_v50 = vstv %s920_s28  ;;  %v589_v52 = vstv %s927_s29  ;;  %s912_s15 = sld [smem:[#allocation5 + $0x10]] }
  0x2d   :  { %v111_v5 = vsel %vm110_vm6, %v105_v56, %v109_v3  ;;  %v134_v6 = vrot.slane %v133_v62, 1  ;;  %v141_v7 = vrot.slane %v140_v63, 1  ;;  %v148_v8 = vrot.slane %v147_v0, 1  ;;  %s914_s16 = sld [smem:[#allocation5 + $0x1e]] }
  0x2e   :  { %v113_v9 = vsel %vm112_vm7, %v105_v56, %v111_v5  ;;  %v155_v10 = vrot.slane %v154_v4, 1  ;;  %v609_v56 = vstv %s929_s30  ;;  %v237_v57 = vstv %s898_s3  ;;  %s923_s17 = sld [smem:[#allocation5 + $0x2d]] }
  0x2f   :  { %v115_v11 = vadd.f32 %v113_v9, %v49_v2  ;;  %v142_v12 = vmax.f32 %v140_v63, %v141_v7  ;;  %v135_v1 = vmax.f32 %v133_v62, %v134_v6  ;;  %v149_v13 = vmax.f32 %v147_v0, %v148_v8  ;;  %s919_s18 = sld [smem:[#allocation5 + $0x11]] }
  0x30   :  { %v156_v14 = vmax.f32 %v154_v4, %v155_v10  ;;  %v677_v59 = vstv %s934_s4  ;;  %v258_v63 = vstv %s900_s5  ;;  %v697_v0 = vstv %s936_s6  ;;  %s930_s19 = sld [smem:[#allocation5 + $0x2e]] }
  0x31   :  { %116 = vst [vmem:[#allocation2] sm:$0xf] %v115_v11  ;;  %v161_v15 = vrot.slane %v142_v12, 6  ;;  %v279_v2 = vstv %s902_s7  ;;  %v339_v6 = vstv %s907_s8  ;;  %v319_v7 = vstv %s905_s9  ;;  %s911_s1 = sld [smem:[#allocation5 + $0x9]] }
  0x32   :  { %v162_v16 = vrot.slane %v156_v14, 6  ;;  %v765_v9 = vstv %s941_s10  ;;  %v359_v14 = vstv %s909_s14  ;;  %s904_s20 = sld [smem:[#allocation5 + $0x8]]  ;;  %vm285_vm0 = vcmask 261120   ;;  %s1051_s14 = smov 126  }
  0x33   :  { %v163_v17 = vsel %vm98_vm1, %v135_v1, %v161_v15  ;;  %v447_v1 = vstv %s916_s12  ;;  %s1174_s21 = sld [smem:[#allocation5 + $0xa]]  ;;  %s1050_s12 = smov 127  }
  0x34   :  { %v164_v18 = vsel %vm98_vm1, %v149_v13, %v162_v16  ;;  %v785_v13 = vstv %s943_s13  ;;  %s1176_s22 = sld [smem:[#allocation5 + $0x1]] }
  0x35   :  { %v167_v19 = vrot.slane %v164_v18, 7  ;;  %v407_v18 = vstv %s912_s15  ;;  %s1184_s24 = sld [smem:[#allocation5 + $0x20]] }
  0x36   :  { %s1188_s27 = sld [smem:[#allocation5 + $0x1f]] }
  0x37   :  { %v168_v20 = vsel %vm106_vm2, %v167_v19, %v163_v17  ;;  %s1196_s28 = sld [smem:[#allocation5 + $0xc]]  ;;  %vm293_vm2 = vcmask 916480  }
  0x38   :  { %v169_v22 = vsel %vm108_vm3, %v167_v19, %v168_v20  ;;  %v178_v26 = vld [vmem:[#allocation2] sm:$0xf]  ;;  %s933_s29 = sld [smem:[#allocation5 + $0x13]]  ;;  %vm476_vm3 = vcmask 1031168  }
  0x39   :  { %v170_v23 = vsel %vm110_vm6, %v167_v19, %v169_v22  ;;  %v179_v27 = vmul.f32 0.25, %v178_v26  ;;  %v535_v22 = vstv %s923_s17  ;;  %v619_v26 = vstv %s930_s19  ;;  %s935_s30 = sld [smem:[#allocation5 + $0x21]]  ;;  %s1053_s17 = smov 124  }
  0x3a   :  { %v171_v24 = vsel %vm112_vm7, %v167_v19, %v170_v23  ;;  %v427_v19 = vstv %s914_s16  ;;  %v495_v23 = vstv %s919_s18  ;;  %s926_s3 = sld [smem:[#allocation5 + $0x12]]  ;;  %s1052_s16 = smov 125   ;;  %vm388_vm6 = vcmask 1039360  }
  0x3b   :  { %v173_v25 = vmax.f32 %v117_v21, %v171_v24  ;;  %s227_s4 = sld [smem:[#allocation5]]  ;;  %s1054_s18 = smov 123   ;;  %vm736_vm7 = vcmask 1006592  }
  0x3c   :  { %s1211_s5 = sld [smem:[#allocation5 + $0xb]]  ;;  %s1055_s19 = smov 122  }
  0x3d   :  { %174 = vst [vmem:[#allocation3] sm:$0xf] %v173_v25  ;;  %s1216_s6 = sld [smem:[#allocation5 + $0x14]] }
  0x3e   :  { %s1230_s7 = sld [smem:[#allocation5 + $0xd]] }
  0x3f   :  { %s944_s8 = sld [smem:[#allocation5 + $0x30]] }
  0x40   :  { %s937_s9 = sld [smem:[#allocation5 + $0x2f]] }
  0x41   :  { %s942_s10 = sld [smem:[#allocation5 + $0x22]] }
  0x42   :  { %s931_s13 = sld [smem:[#allocation5 + $0x5]] }
  0x43   :  { %s938_s15 = sld [smem:[#allocation5 + $0x6]] }
  0x44   :  { %v180_v28 = vld [vmem:[#allocation3] sm:$0xf] }
  0x45   :  { %v181_v29 = vadd.f32 %v180_v28, %v179_v27 }
  0x47   :  { %187 = vrot.lane.b32.xlu0 %v181_v29, %s1045_s0  ;;  %s897_s0 = sld [smem:[#allocation5 + $0x7]] }
  0xb9   :  { %v188_v30 = vpop.permute.xlu0 %187 }
  0xba   :  { %v189_v31 = vrot.slane %v188_v30, 6 }
  0xbc   :  { %v191_v32 = vsel %vm190_vm12, %v189_v31, %v188_v30 }
  0xbd   :  { %198 = vst.msk [vmem:[#allocation4] sm:$0x3f] %vm197_vm13, %v191_v32  ;;  %v233_v32 = vstv %s897_s0  ;;  %vm824_vm13 = vcmask 998400   ;;  %s1056_s0 = smov [#allocation10]  }
  0xc4   :  { %v1101_v36 = vld [vmem:[#allocation4] sm:$0x3f] }
  0xc5   :  { %v1103_v37 = vld [vmem:[#allocation4] sm:$0x3f]  ;;  %v350_v38 = vmul.f32 %v349_v33, %v1101_v36  ;;  %v330_v46 = vmul.f32 %v329_v43, %v1101_v36  ;;  %v340_v10 = vmul.f32 %v339_v6, %v1101_v36  ;;  %v320_v11 = vmul.f32 %v319_v7, %v1101_v36 }
  0xc6   :  { %v270_v39 = vmul.f32 %v269_v34, %v1103_v37  ;;  %v249_v40 = vmul.f32 %v248_v35, %v1103_v37  ;;  %v1111_v41 = vld [vmem:[#allocation4] sm:$0x3f]  ;;  %v238_v61 = vmul.f32 %v237_v57, %v1103_v37  ;;  %v259_v3 = vmul.f32 %v258_v63, %v1103_v37 }
  0xc7   :  { %352 = vrot.lane.b32.xlu2 %v350_v38, %s1046_s25  ;;  %v418_v45 = vmul.f32 %v417_v42, %v1111_v41  ;;  %v438_v47 = vmul.f32 %v437_v44, %v1111_v41  ;;  %v1119_v48 = vld [vmem:[#allocation4] sm:$0x3f]  ;;  %v280_v5 = vmul.f32 %v279_v2, %v1103_v37  ;;  %v448_v15 = vmul.f32 %v447_v1, %v1111_v41 }
  0xc8   :  { %272 = vrot.lane.b32.xlu1 %v270_v39, %s1046_s25  ;;  %251 = vrot.lane.b32.xlu0 %v249_v40, %s1047_s26  ;;  %v1121_v51 = vld [vmem:[#allocation4] sm:$0x3f]  ;;  %v526_v53 = vmul.f32 %v525_v49, %v1119_v48  ;;  %v506_v54 = vmul.f32 %v505_v50, %v1119_v48  ;;  %v360_v17 = vmul.f32 %v359_v14, %v1101_v36  ;;  %v403_v44 = vstv %s911_s1  ;;  %s884_s1 = sshll.u32 %s1056_s0, 4  ;;  %s885_s1 = int_to_ptr.vmem [resolvable:$true] %s884_s1 }
  0xc9   :  { %v590_v55 = vmul.f32 %v589_v52, %v1121_v51  ;;  %v1129_v58 = vld [vmem:[#allocation4] sm:$0x3f]  ;;  %v610_v60 = vmul.f32 %v609_v56, %v1121_v51  ;;  %v408_v20 = vmul.f32 %v407_v18, %v1111_v41  ;;  %v428_v21 = vmul.f32 %v427_v19, %v1111_v41 }
  0xca   :  { %v678_v62 = vmul.f32 %v677_v59, %v1129_v58  ;;  %v698_v4 = vmul.f32 %v697_v0, %v1129_v58  ;;  %v1143_v8 = vld [vmem:[#allocation4] sm:$0x3f]  ;;  %v536_v24 = vmul.f32 %v535_v22, %v1119_v48  ;;  %v496_v25 = vmul.f32 %v495_v23, %v1119_v48 }
  0xcb   :  { %v766_v12 = vmul.f32 %v765_v9, %v1143_v8  ;;  %v786_v16 = vmul.f32 %v785_v13, %v1143_v8  ;;  %v620_v27 = vmul.f32 %v619_v26, %v1121_v51  ;;  %v234_v39 = vmul.f32 %v233_v32, %v1103_v37 }
  0xcc   :  { %v599_v13 = vstv %s1184_s24  ;;  %v515_v18 = vstv %s1188_s27 }
  0xcf   :  { %420 = vrot.lane.b32.xlu2 %v418_v45, %s1047_s26 }
  0xd0   :  { %332 = vrot.lane.b32.xlu1 %v330_v46, %s1047_s26  ;;  %440 = vrot.lane.b32.xlu0 %v438_v47, %s1046_s25  ;;  %v315_v46 = vstv %s904_s20 }
  0xd1   :  { %v316_v56 = vmul.f32 %v315_v46, %v1101_v36 }
  0xd7   :  { %528 = vrot.lane.b32.xlu2 %v526_v53, %s1046_s25  ;;  %v404_v53 = vmul.f32 %v403_v44, %v1111_v41 }
  0xd8   :  { %508 = vrot.lane.b32.xlu1 %v506_v54, %s1047_s26  ;;  %592 = vrot.lane.b32.xlu0 %v590_v55, %s1047_s26 }
  0xdf   :  { %240 = vrot.lane.b32.xlu2 %v238_v61, %s1047_s26 }
  0xe0   :  { %612 = vrot.lane.b32.xlu1 %v610_v60, %s1046_s25  ;;  %680 = vrot.lane.b32.xlu0 %v678_v62, %s1047_s26 }
  0xe7   :  { %700 = vrot.lane.b32.xlu2 %v698_v4, %s1046_s25  ;;  %v311_v4 = vstv %s1176_s22  ;;  %s886_s22 = sshll.u32 %s1317_s2, 4  ;;  %s887_s22 = int_to_ptr.hbm [resolvable:$true] %s886_s22 }
  0xe8   :  { %261 = vrot.lane.b32.xlu1 %v259_v3, %s1046_s25  ;;  %282 = vrot.lane.b32.xlu0 %v280_v5, %s1048_s11  ;;  %v491_v3 = vstv %s1174_s21  ;;  %v312_v1 = vmul.f32 %v311_v4, %v1101_v36 }
  0xef   :  { %322 = vrot.lane.b32.xlu2 %v320_v11, %s1047_s26 }
  0xf0   :  { %342 = vrot.lane.b32.xlu1 %v340_v10, %s1046_s25  ;;  %768 = vrot.lane.b32.xlu0 %v766_v12, %s1047_s26  ;;  %v492_v12 = vmul.f32 %v491_v3, %v1119_v48 }
  0xf7   :  { %788 = vrot.lane.b32.xlu2 %v786_v16, %s1046_s25 }
  0xf8   :  { %450 = vrot.lane.b32.xlu1 %v448_v15, %s1048_s11  ;;  %362 = vrot.lane.b32.xlu0 %v360_v17, %s1048_s11 }
  0xff   :  { %410 = vrot.lane.b32.xlu2 %v408_v20, %s1047_s26  ;;  %v600_v20 = vmul.f32 %v599_v13, %v1121_v51 }
 0x100   :  { %430 = vrot.lane.b32.xlu0 %v428_v21, %s1046_s25  ;;  %v516_v21 = vmul.f32 %v515_v18, %v1119_v48 }
 0x107   :  { %538 = vrot.lane.b32.xlu2 %v536_v24, %s1048_s11 }
 0x108   :  { %498 = vrot.lane.b32.xlu0 %v496_v25, %s1047_s26  ;;  %v667_v25 = vstv %s933_s29 }
 0x109   :  { %v668_v32 = vmul.f32 %v667_v25, %v1129_v58 }
 0x110   :  { %622 = vrot.lane.b32.xlu0 %v620_v27, %s1048_s11  ;;  %v687_v27 = vstv %s935_s30 }
 0x121   :  { %v353_v28 = vpop.permute.xlu2 %352 }
 0x122   :  { %v354_v37 = vrot.slane %v353_v28, 2 }
 0x124   :  { %v355_v63 = vsel %vm264_vm15, %v353_v28, %v354_v37  ;;  %v663_v28 = vstv %s1196_s28 }
 0x129   :  { %v421_v29 = vpop.permute.xlu2 %420 }
 0x12a   :  { %v422_v40 = vrot.slane %v421_v29, 2 }
 0x12c   :  { %v423_v49 = vsel %vm243_vm14, %v421_v29, %v422_v40  ;;  %v579_v29 = vstv %s926_s3  ;;  %v664_v40 = vmul.f32 %v663_v28, %v1129_v58 }
 0x12d   :  { %v425_v59 = vadd.f32 %v423_v49, %v404_v53 }
 0x131   :  { %v1167_v30 = vpop.permute.xlu2 %528 }
 0x132   :  { %v530_v7 = vrot.slane %v1167_v30, 2 }
 0x134   :  { %v531_v19 = vsel %vm264_vm15, %v1167_v30, %v530_v7  ;;  %v228_v30 = vstv %s227_s4 }
 0x139   :  { %v1169_v33 = vpop.permute.xlu2 %240 }
 0x13a   :  { %v273_v31 = vpop.permute.xlu1 %272  ;;  %v252_v34 = vpop.permute.xlu0 %251  ;;  %v242_v26 = vrot.slane %v1169_v33, 2 }
 0x13b   :  { %v274_v35 = vrot.slane %v273_v31, 2  ;;  %v253_v38 = vrot.slane %v252_v34, 2 }
 0x13d   :  { %v254_v42 = vsel %vm243_vm14, %v252_v34, %v253_v38  ;;  %v275_v45 = vsel %vm264_vm15, %v273_v31, %v274_v35  ;;  %v226_v31 = vld [vmem:[#allocation4] sm:$0xf]  ;;  %v688_v38 = vmul.f32 %v687_v27, %v1129_v58 }
 0x13e   :  { %v256_v43 = vadd.f32 %v254_v42, %v234_v39  ;;  %v244_v39 = vsel %vm243_vm14, %v1169_v33, %v242_v26  ;;  %v580_v42 = vmul.f32 %v579_v29, %v1121_v51 }
 0x140   :  { %v277_v47 = vadd.f32 %v275_v45, %v256_v43  ;;  %v229_v43 = vmul.f32 %v228_v30, %v226_v31  ;;  %v575_v45 = vstv %s1211_s5 }
 0x141   :  { %v1179_v52 = vpop.permute.xlu2 %700 }
 0x142   :  { %v333_v50 = vpop.permute.xlu1 %332  ;;  %v441_v55 = vpop.permute.xlu0 %440  ;;  %290 = vrot.lane.b32.xlu1 %v277_v47, %s1049_s23  ;;  %v702_v44 = vrot.slane %v1179_v52, 2  ;;  %v246_v37 = vadd.f32 %v244_v39, %v229_v43 }
 0x143   :  { %v334_v54 = vrot.slane %v333_v50, 2  ;;  %v442_v57 = vrot.slane %v441_v55, 2 }
 0x145   :  { %v335_v60 = vsel %vm243_vm14, %v333_v50, %v334_v54  ;;  %v443_v62 = vsel %vm264_vm15, %v441_v55, %v442_v57  ;;  %v576_v55 = vmul.f32 %v575_v45, %v1121_v51  ;;  %v755_v57 = vstv %s1216_s6 }
 0x146   :  { %v337_v61 = vadd.f32 %v335_v60, %v316_v56  ;;  %v445_v0 = vadd.f32 %v443_v62, %v425_v59  ;;  %v703_v59 = vsel %vm264_vm15, %v1179_v52, %v702_v44  ;;  %v756_v3 = vmul.f32 %v755_v57, %v1143_v8 }
 0x148   :  { %v357_v2 = vadd.f32 %v355_v63, %v337_v61  ;;  %457 = vrot.lane.b32.xlu2 %v445_v0, %s1049_s23 }
 0x149   :  { %v323_v6 = vpop.permute.xlu2 %322 }
 0x14a   :  { %v509_v5 = vpop.permute.xlu1 %508  ;;  %v593_v10 = vpop.permute.xlu0 %592  ;;  %v324_v11 = vrot.slane %v323_v6, 2  ;;  %369 = vrot.lane.b32.xlu1 %v357_v2, %s1049_s23 }
 0x14b   :  { %v510_v9 = vrot.slane %v509_v5, 2  ;;  %v594_v34 = vrot.slane %v593_v10, 2 }
 0x14c   :  { %v325_v15 = vsel %vm243_vm14, %v323_v6, %v324_v11  ;;  %v751_v6 = vstv %s1230_s7 }
 0x14d   :  { %v511_v14 = vsel %vm243_vm14, %v509_v5, %v510_v9  ;;  %v1203_v17 = vadd.f32 %v325_v15, %v312_v1  ;;  %v595_v53 = vsel %vm243_vm14, %v593_v10, %v594_v34  ;;  %v795_v10 = vstv %s944_s8 }
 0x14e   :  { %v513_v16 = vadd.f32 %v511_v14, %v492_v12  ;;  %v597_v62 = vadd.f32 %v595_v53, %v576_v55  ;;  %v752_v11 = vmul.f32 %v751_v6, %v1143_v8  ;;  %v707_v1 = vstv %s937_s9 }
 0x14f   :  { %v796_v14 = vmul.f32 %v795_v10, %v1143_v8  ;;  %v708_v18 = vmul.f32 %v707_v1, %v1129_v58 }
 0x150   :  { %v533_v36 = vadd.f32 %v531_v19, %v513_v16  ;;  %602 = vrot.lane.b32.xlu2 %v600_v20, %s1046_s25  ;;  %v775_v19 = vstv %s942_s10 }
 0x151   :  { %v789_v5 = vpop.permute.xlu2 %788  ;;  %v776_v20 = vmul.f32 %v775_v19, %v1143_v8 }
 0x152   :  { %v613_v22 = vpop.permute.xlu1 %612  ;;  %545 = vrot.lane.b32.xlu0 %v533_v36, %s1049_s23  ;;  %v681_v23 = vpop.permute.xlu0 %680  ;;  %518 = vrot.lane.b32.xlu1 %v516_v21, %s1046_s25  ;;  %v790_v52 = vrot.slane %v789_v5, 2 }
 0x153   :  { %v682_v24 = vrot.slane %v681_v23, 2  ;;  %v614_v46 = vrot.slane %v613_v22, 2 }
 0x154   :  { %v791_v15 = vsel %vm264_vm15, %v789_v5, %v790_v52 }
 0x155   :  { %v683_v35 = vsel %vm243_vm14, %v681_v23, %v682_v24  ;;  %v615_v60 = vsel %vm264_vm15, %v613_v22, %v614_v46 }
 0x156   :  { %v685_v49 = vadd.f32 %v683_v35, %v664_v40  ;;  %v617_v4 = vadd.f32 %v615_v60, %v597_v62 }
 0x158   :  { %670 = vrot.lane.b32.xlu2 %v668_v32, %s1047_s26  ;;  %v705_v0 = vadd.f32 %v703_v59, %v685_v49 }
 0x159   :  { %v411_v22 = vpop.permute.xlu2 %410 }
 0x15a   :  { %v262_v47 = vpop.permute.xlu1 %261  ;;  %690 = vrot.lane.b32.xlu0 %v688_v38, %s1046_s25  ;;  %v283_v33 = vpop.permute.xlu0 %282  ;;  %582 = vrot.lane.b32.xlu1 %v580_v42, %s1047_s26  ;;  %v412_v35 = vrot.slane %v411_v22, 2 }
 0x15b   :  { %v263_v50 = vrot.slane %v262_v47, 2  ;;  %v284_v54 = vrot.slane %v283_v33, 2 }
 0x15c   :  { %v413_v46 = vsel %vm243_vm14, %v411_v22, %v412_v35 }
 0x15d   :  { %v265_v56 = vsel %vm264_vm15, %v262_v47, %v263_v50  ;;  %v286_v63 = vsel %vm285_vm0, %v283_v33, %v284_v54 }
 0x15e   :  { %v267_v61 = vadd.f32 %v265_v56, %v246_v37 }
 0x160   :  { %v288_v2 = vadd.f32 %v286_v63, %v267_v61  ;;  %717 = vrot.lane.b32.xlu2 %v705_v0, %s1049_s23 }
 0x161   :  { %v539_v25 = vpop.permute.xlu2 %538 }
 0x162   :  { %758 = vrot.lane.b32.xlu0 %v756_v3, %s1047_s26  ;;  %v769_v7 = vpop.permute.xlu0 %768  ;;  %629 = vrot.lane.b32.xlu1 %v617_v4, %s1049_s23  ;;  %v343_v21 = vpop.permute.xlu1 %342  ;;  %s910_s26 = sld [smem:[#allocation5 + $0x2]]  ;;  %v540_v52 = vrot.slane %v539_v25, 2 }
 0x163   :  { %v770_v9 = vrot.slane %v769_v7, 2  ;;  %v344_v28 = vrot.slane %v343_v21, 2 }
 0x165   :  { %v771_v12 = vsel %vm243_vm14, %v769_v7, %v770_v9  ;;  %v345_v34 = vsel %vm264_vm15, %v343_v21, %v344_v28 }
 0x166   :  { %v773_v13 = vadd.f32 %v771_v12, %v752_v11  ;;  %v347_v42 = vadd.f32 %v345_v34, %v1203_v17 }
 0x168   :  { %798 = vrot.lane.b32.xlu2 %v796_v14, %s1048_s11  ;;  %v793_v16 = vadd.f32 %v791_v15, %v773_v13  ;;  %v399_v40 = vstv %s910_s26 }
 0x169   :  { %v400_v50 = vmul.f32 %v399_v40, %v1111_v41 }
 0x16a   :  { %805 = vrot.lane.b32.xlu0 %v793_v16, %s1049_s23  ;;  %710 = vrot.lane.b32.xlu1 %v708_v18, %s1048_s11  ;;  %v363_v36 = vpop.permute.xlu0 %362  ;;  %v451_v24 = vpop.permute.xlu1 %450  ;;  %s924_s11 = sld [smem:[#allocation5 + $0x4]] }
 0x16b   :  { %v364_v30 = vrot.slane %v363_v36, 2  ;;  %v415_v55 = vadd.f32 %v413_v46, %v400_v50  ;;  %v452_v57 = vrot.slane %v451_v24, 2 }
 0x16d   :  { %v365_v39 = vsel %vm285_vm0, %v363_v36, %v364_v30 }
 0x16e   :  { %v367_v47 = vadd.f32 %v365_v39, %v347_v42  ;;  %v659_v39 = vstv %s931_s13 }
 0x170   :  { %v571_v14 = vstv %s924_s11 }
 0x171   :  { %v572_v21 = vmul.f32 %v571_v14, %v1121_v51 }
 0x172   :  { %778 = vrot.lane.b32.xlu1 %v776_v20, %s1046_s25  ;;  %v431_v23 = vpop.permute.xlu0 %430  ;;  %s917_s25 = sld [smem:[#allocation5 + $0x3]] }
 0x173   :  { %v432_v43 = vrot.slane %v431_v23, 2 }
 0x175   :  { %v433_v37 = vsel %vm264_vm15, %v431_v23, %v432_v43 }
 0x176   :  { %v435_v60 = vadd.f32 %v433_v37, %v415_v55 }
 0x178   :  { %v487_v61 = vstv %s917_s25 }
 0x179   :  { %v488_v3 = vmul.f32 %v487_v61, %v1119_v48  ;;  %v541_v48 = vsel %vm285_vm0, %v539_v25, %v540_v52 }
 0x17a   :  { %v499_v26 = vpop.permute.xlu0 %498 }
 0x17b   :  { %v500_v53 = vrot.slane %v499_v26, 2 }
 0x17d   :  { %v501_v41 = vsel %vm243_vm14, %v499_v26, %v500_v53 }
 0x17e   :  { %v503_v9 = vadd.f32 %v501_v41, %v488_v3  ;;  %v747_v41 = vstv %s938_s15 }
 0x182   :  { %v1261_v49 = vpop.permute.xlu0 %622 }
 0x183   :  { %v624_v26 = vrot.slane %v1261_v49, 2 }
 0x1a2   :  { %v458_v38 = vpop.permute.xlu2 %457 }
 0x1a3   :  { %v459_v59 = vrot.slane %v458_v38, 2 }
 0x1a5   :  { %v460_v4 = vsel %vm293_vm2, %v458_v38, %v459_v59  ;;  %v625_v38 = vsel %vm285_vm0, %v1261_v49, %v624_v26 }
 0x1aa   :  { %v603_v62 = vpop.permute.xlu2 %602 }
 0x1ab   :  { %v604_v19 = vrot.slane %v603_v62, 2 }
 0x1ad   :  { %v605_v28 = vsel %vm264_vm15, %v603_v62, %v604_v19 }
 0x1b2   :  { %v671_v20 = vpop.permute.xlu2 %670 }
 0x1b3   :  { %v672_v34 = vrot.slane %v671_v20, 2 }
 0x1b4   :  { %v291_v27 = vpop.permute.xlu1 %290 }
 0x1b5   :  { %v292_v29 = vrot.slane %v291_v27, 2 }
 0x1b7   :  { %v294_v31 = vsel %vm293_vm2, %v291_v27, %v292_v29 }
 0x1b8   :  { %v296_v32 = vadd.f32 %v294_v31, %v288_v2  ;;  %v453_v2 = vsel %vm285_vm0, %v451_v24, %v452_v57 }
 0x1b9   :  { %v455_v6 = vadd.f32 %v453_v2, %v435_v60 }
 0x1ba   :  { %300 = vst [vmem:[#allocation1] ss:$4 sm:$0xff] %v296_v32 }
 0x1bb   :  { %v462_v10 = vadd.f32 %v460_v4, %v455_v6  ;;  %v748_v4 = vmul.f32 %v747_v41, %v1143_v8 }
 0x1bc   :  { %v370_v44 = vpop.permute.xlu1 %369 }
 0x1bd   :  { %v371_v45 = vrot.slane %v370_v44, 2 }
 0x1bf   :  { %v372_v33 = vsel %vm293_vm2, %v370_v44, %v371_v45  ;;  %v718_v44 = vpop.permute.xlu2 %717  ;;  %v673_v45 = vsel %vm243_vm14, %v671_v20, %v672_v34 }
 0x1c0   :  { %v374_v54 = vadd.f32 %v372_v33, %v367_v47  ;;  %v660_v47 = vmul.f32 %v659_v39, %v1129_v58  ;;  %v719_v57 = vrot.slane %v718_v44, 2 }
 0x1c1   :  { %v1266_v56 = vld.sshfl [vmem:[#allocation1] sm:$0xff pattern:$0x73625140]  ;;  %v1268_v17 = vld.sshfl [vmem:[#allocation1 + $0x8] sm:$0xff pattern:$0x73625140] }
 0x1c2   :  { %378 = vst [vmem:[#allocation1] ss:$4 sm:$0xff] %v374_v54  ;;  %v675_v49 = vadd.f32 %v673_v45, %v660_v47 }
 0x1c4   :  { %v519_v63 = vpop.permute.xlu1 %518  ;;  %v546_v5 = vpop.permute.xlu0 %545 }
 0x1c5   :  { %v520_v0 = vrot.slane %v519_v63, 2  ;;  %v547_v16 = vrot.slane %v546_v5, 2 }
 0x1c7   :  { %v521_v7 = vsel %vm264_vm15, %v519_v63, %v520_v0  ;;  %v548_v27 = vsel %vm293_vm2, %v546_v5, %v547_v16  ;;  %v720_v63 = vsel %vm293_vm2, %v718_v44, %v719_v57  ;;  %v799_v0 = vpop.permute.xlu2 %798 }
 0x1c8   :  { %v523_v1 = vadd.f32 %v521_v7, %v503_v9  ;;  %v800_v9 = vrot.slane %v799_v0, 2 }
 0x1c9   :  { %v381_v11 = vld.sshfl [vmem:[#allocation1 + $0x10] sm:$0xff pattern:$0x73625140]  ;;  %v380_v12 = vld.sshfl [vmem:[#allocation1 + $0x8] sm:$0xff pattern:$0x73625140] }
 0x1ca   :  { %386 = vrot.lane.b32.xlu1 %v381_v11, %s1050_s12  ;;  %384 = vrot.lane.b32.xlu0 %v380_v12, %s1050_s12  ;;  %v379_v13 = vld.sshfl [vmem:[#allocation1] sm:$0xff pattern:$0x73625140]  ;;  %v543_v36 = vadd.f32 %v541_v48, %v523_v1 }
 0x1cb   :  { %466 = vst [vmem:[#allocation1] ss:$4 sm:$0xff] %v462_v10 }
 0x1cc   :  { %v583_v15 = vpop.permute.xlu1 %582  ;;  %v691_v23 = vpop.permute.xlu0 %690  ;;  %v550_v29 = vadd.f32 %v548_v27, %v543_v36 }
 0x1cd   :  { %v584_v18 = vrot.slane %v583_v15, 2  ;;  %v692_v40 = vrot.slane %v691_v23, 2 }
 0x1cf   :  { %v585_v22 = vsel %vm243_vm14, %v583_v15, %v584_v18  ;;  %v693_v33 = vsel %vm264_vm15, %v691_v23, %v692_v40  ;;  %v801_v15 = vsel %vm285_vm0, %v799_v0, %v800_v9 }
 0x1d0   :  { %v587_v24 = vadd.f32 %v585_v22, %v572_v21  ;;  %v695_v60 = vadd.f32 %v693_v33, %v675_v49 }
 0x1d2   :  { %382 = vrot.lane.b32.xlu1 %v379_v13, %s1050_s12  ;;  %v469_v25 = vld.sshfl [vmem:[#allocation1 + $0x10] sm:$0xff pattern:$0x73625140]  ;;  %v468_v30 = vld.sshfl [vmem:[#allocation1 + $0x8] sm:$0xff pattern:$0x73625140]  ;;  %v607_v31 = vadd.f32 %v605_v28, %v587_v24 }
 0x1d3   :  { %474 = vrot.lane.b32.xlu2 %v469_v25, %s1051_s14  ;;  %v467_v32 = vld.sshfl [vmem:[#allocation1] sm:$0xff pattern:$0x73625140] }
 0x1d4   :  { %v630_v51 = vpop.permute.xlu1 %629  ;;  %552 = vst [vmem:[#allocation1] ss:$4 sm:$0xff] %v550_v29  ;;  %v627_v42 = vadd.f32 %v625_v38, %v607_v31  ;;  %v759_v50 = vpop.permute.xlu0 %758  ;;  %v199_v31 = vlaneseq }
 0x1d5   :  { %v631_v35 = vrot.slane %v630_v51, 2  ;;  %v760_v61 = vrot.slane %v759_v50, 2 }
 0x1d7   :  { %v632_v43 = vsel %vm293_vm2, %v630_v51, %v631_v35  ;;  %v761_v3 = vsel %vm243_vm14, %v759_v50, %v760_v61 }
 0x1d8   :  { %v634_v46 = vadd.f32 %v632_v43, %v627_v42  ;;  %v763_v12 = vadd.f32 %v761_v3, %v748_v4 }
 0x1da   :  { %472 = vrot.lane.b32.xlu1 %v468_v30, %s1051_s14 }
 0x1db   :  { %470 = vrot.lane.b32.xlu2 %v467_v32, %s1051_s14  ;;  %v555_v37 = vld.sshfl [vmem:[#allocation1 + $0x10] sm:$0xff pattern:$0x73625140]  ;;  %v553_v53 = vld.sshfl [vmem:[#allocation1] sm:$0xff pattern:$0x73625140] }
 0x1dc   :  { %560 = vrot.lane.b32.xlu0 %v555_v37, %s1052_s16  ;;  %v711_v54 = vpop.permute.xlu1 %710  ;;  %v554_v55 = vld.sshfl [vmem:[#allocation1 + $0x8] sm:$0xff pattern:$0x73625140]  ;;  %v806_v5 = vpop.permute.xlu0 %805  ;;  %v200_v32 = vand.u32 127, %v199_v31 }
 0x1dd   :  { %v712_v59 = vrot.slane %v711_v54, 2  ;;  %638 = vst [vmem:[#allocation1] ss:$4 sm:$0xff] %v634_v46  ;;  %v807_v1 = vrot.slane %v806_v5, 2 }
 0x1de   :  { %v201_v35 = vadd.s32 128, %v200_v32  ;;  %v206_v45 = vand.u32 15, %v200_v32 }
 0x1df   :  { %v713_v58 = vsel %vm285_vm0, %v711_v54, %v712_v59  ;;  %v808_v8 = vsel %vm293_vm2, %v806_v5, %v807_v1 }
 0x1e0   :  { %v715_v62 = vadd.f32 %v713_v58, %v695_v60  ;;  %v213_v39 = vand.u32 15, %v201_v35  ;;  %vm297_vm0 = vcmp.ge.s32.totalorder %v206_v45, 3  ;;  %vm375_vm2 = vcmp.ge.s32.totalorder %v206_v45, 2 }
 0x1e2   :  { %v722_v2 = vadd.f32 %v720_v63, %v715_v62  ;;  %vm464_vm5 = vcmp.ge.s32.totalorder %v213_v39, 1  ;;  %vm298_vm8 = vcmp.ge.s32.totalorder %v213_v39, 3  ;;  %vm636_vm10 = vcmp.lt.s32.totalorder %v213_v39, 15 }
 0x1e3   :  { %558 = vrot.lane.b32.xlu2 %v554_v55, %s1052_s16  ;;  %vm376_vm11 = vcmp.ge.s32.totalorder %v213_v39, 2  ;;  %vm724_vm12 = vcmp.lt.s32.totalorder %v213_v39, 14  ;;  %v306_v37 = vsel %vm298_vm8, %v1268_v17, 0.0  ;;  %vm812_vm14 = vcmp.lt.s32.totalorder %v213_v39, 13 }
 0x1e4   :  { %v641_v6 = vld.sshfl [vmem:[#allocation1 + $0x10] sm:$0xff pattern:$0x73625140]  ;;  %v640_v7 = vld.sshfl [vmem:[#allocation1 + $0x8] sm:$0xff pattern:$0x73625140]  ;;  %v779_v52 = vpop.permute.xlu1 %778 }
 0x1e5   :  { %646 = vrot.lane.b32.xlu1 %v641_v6, %s1053_s17  ;;  %644 = vrot.lane.b32.xlu0 %v640_v7, %s1053_s17  ;;  %v780_v10 = vrot.slane %v779_v52, 2  ;;  %v639_v11 = vld.sshfl [vmem:[#allocation1] sm:$0xff pattern:$0x73625140]  ;;  %v305_v6 = vsel %vm297_vm0, %v1266_v56, 0.0 }
 0x1e6   :  { %726 = vst [vmem:[#allocation1] ss:$4 sm:$0xff] %v722_v2 }
 0x1e7   :  { %v781_v13 = vsel %vm264_vm15, %v779_v52, %v780_v10  ;;  %vm463_vm15 = vcmp.ge.s32.totalorder %v206_v45, 1 }
 0x1e8   :  { %v783_v14 = vadd.f32 %v781_v13, %v763_v12 }
 0x1ea   :  { %v803_v48 = vadd.f32 %v801_v15, %v783_v14 }
 0x1eb   :  { %642 = vrot.lane.b32.xlu2 %v639_v11, %s1053_s17 }
 0x1ec   :  { %v810_v16 = vadd.f32 %v808_v8, %v803_v48 }
 0x1ed   :  { %v729_v18 = vld.sshfl [vmem:[#allocation1 + $0x10] sm:$0xff pattern:$0x73625140]  ;;  %v727_v19 = vld.sshfl [vmem:[#allocation1] sm:$0xff pattern:$0x73625140] }
 0x1ee   :  { %734 = vrot.lane.b32.xlu1 %v729_v18, %s1054_s18  ;;  %v728_v20 = vld.sshfl [vmem:[#allocation1 + $0x8] sm:$0xff pattern:$0x73625140] }
 0x1ef   :  { %732 = vrot.lane.b32.xlu0 %v728_v20, %s1054_s18  ;;  %814 = vst [vmem:[#allocation1] ss:$4 sm:$0xff] %v810_v16 }
 0x1f6   :  { %556 = vrot.lane.b32.xlu1 %v553_v53, %s1052_s16  ;;  %v817_v36 = vld.sshfl [vmem:[#allocation1 + $0x10] sm:$0xff pattern:$0x73625140]  ;;  %v816_v21 = vld.sshfl [vmem:[#allocation1 + $0x8] sm:$0xff pattern:$0x73625140] }
 0x1f7   :  { %822 = vrot.lane.b32.xlu0 %v817_v36, %s1055_s19  ;;  %820 = vrot.lane.b32.xlu2 %v816_v21, %s1055_s19  ;;  %v815_v22 = vld.sshfl [vmem:[#allocation1] sm:$0xff pattern:$0x73625140] }
 0x1ff   :  { %730 = vrot.lane.b32.xlu2 %v727_v19, %s1054_s18  ;;  %818 = vrot.lane.b32.xlu0 %v815_v22, %s1055_s19 }
 0x22d   :  { %v475_v24 = vpop.permute.xlu2 %474 }
 0x235   :  { %v471_v28 = vpop.permute.xlu2 %470 }
 0x23c   :  { %v387_v23 = vpop.permute.xlu1 %386  ;;  %v385_v27 = vpop.permute.xlu0 %384 }
 0x23d   :  { %v559_v30 = vpop.permute.xlu2 %558  ;;  %v390_v50 = vsel %vm388_vm6, %v385_v27, %v387_v23 }
 0x23e   :  { %v394_v55 = vsel %vm376_vm11, %v390_v50, 0.0 }
 0x244   :  { %v383_v26 = vpop.permute.xlu1 %382 }
 0x245   :  { %v643_v38 = vpop.permute.xlu2 %642  ;;  %v389_v17 = vsel %vm388_vm6, %v383_v26, %v385_v27  ;;  %vm811_vm6 = vcmp.lt.s32.totalorder %v206_v45, 13 }
 0x246   :  { %v393_v52 = vsel %vm375_vm2, %v389_v17, 0.0 }
 0x24c   :  { %v473_v29 = vpop.permute.xlu1 %472 }
 0x24d   :  { %v478_v43 = vsel %vm476_vm3, %v473_v29, %v475_v24  ;;  %v477_v57 = vsel %vm476_vm3, %v471_v28, %v473_v29  ;;  %vm723_vm3 = vcmp.lt.s32.totalorder %v206_v45, 14 }
 0x24e   :  { %v561_v25 = vpop.permute.xlu0 %560  ;;  %v482_v46 = vsel %vm464_vm5, %v478_v43, 0.0  ;;  %vm635_vm5 = vcmp.lt.s32.totalorder %v206_v45, 15  ;;  %v481_v0 = vsel %vm463_vm15, %v477_v57, 0.0 }
 0x24f   :  { %v564_v53 = vsel %vm562_vm9, %v559_v30, %v561_v25  ;;  %v484_v54 = vadd.f32 %v482_v46, %v306_v37  ;;  %v483_v9 = vadd.f32 %v481_v0, %v305_v6 }
 0x250   :  { %v568_v61 = vadd.f32 %v564_v53, %v394_v55 }
 0x251   :  { %v821_v47 = vpop.permute.xlu2 %820 }
 0x257   :  { %v647_v51 = vpop.permute.xlu1 %646  ;;  %v645_v34 = vpop.permute.xlu0 %644 }
 0x258   :  { %v650_v44 = vsel %vm648_vm4, %v645_v34, %v647_v51  ;;  %v649_v2 = vsel %vm648_vm4, %v643_v38, %v645_v34 }
 0x259   :  { %v654_v49 = vsel %vm636_vm10, %v650_v44, 0.0  ;;  %v653_v10 = vsel %vm635_vm5, %v649_v2, 0.0  ;;  %v731_v11 = vpop.permute.xlu2 %730 }
 0x25a   :  { %v656_v58 = vadd.f32 %v654_v49, %v484_v54  ;;  %v655_v15 = vadd.f32 %v653_v10, %v483_v9 }
 0x260   :  { %v735_v40 = vpop.permute.xlu1 %734 }
 0x261   :  { %v733_v42 = vpop.permute.xlu0 %732 }
 0x262   :  { %v738_v33 = vsel %vm736_vm7, %v733_v42, %v735_v40  ;;  %v737_v12 = vsel %vm736_vm7, %v731_v11, %v733_v42 }
 0x263   :  { %v742_v59 = vsel %vm724_vm12, %v738_v33, 0.0  ;;  %v741_v8 = vsel %vm723_vm3, %v737_v12, 0.0 }
 0x264   :  { %v744_v3 = vadd.f32 %v742_v59, %v568_v61 }
 0x268   :  { %v557_v62 = vpop.permute.xlu1 %556 }
 0x269   :  { %v823_v60 = vpop.permute.xlu0 %822  ;;  %v563_v5 = vsel %vm562_vm9, %v557_v62, %v559_v30 }
 0x26a   :  { %v826_v63 = vsel %vm824_vm13, %v821_v47, %v823_v60  ;;  %v567_v1 = vadd.f32 %v563_v5, %v393_v52 }
 0x26b   :  { %v830_v41 = vsel %vm812_vm14, %v826_v63, 0.0 }
 0x26c   :  { %v832_v4 = vadd.f32 %v830_v41, %v656_v58  ;;  %v743_v18 = vadd.f32 %v741_v8, %v567_v1 }
 0x26e   :  { %v834_v7 = vadd.f32 %v832_v4, %v744_v3 }
 0x270   :  { %v946_v13 = vmul.f32 -1.442695, %v834_v7 }
 0x271   :  { %v819_v14 = vpop.permute.xlu0 %818 }
 0x272   :  { %965 = vpow2.f32 %v946_v13  ;;  %v825_v48 = vsel %vm824_vm13, %v819_v14, %v821_v47 }
 0x273   :  { %v829_v16 = vsel %vm811_vm6, %v825_v48, 0.0 }
 0x274   :  { %v831_v56 = vadd.f32 %v829_v16, %v655_v15 }
 0x276   :  { %v833_v19 = vadd.f32 %v831_v56, %v743_v18 }
 0x278   :  { %v966_v20 = vpop.eup %965  ;;  %v945_v36 = vmul.f32 -1.442695, %v833_v19 }
 0x279   :  { %v842_v21 = vadd.f32 1.0, %v966_v20 }
 0x27a   :  { %967 = vpow2.f32 %v945_v36 }
 0x27b   :  { %969 = vrcp.f32 %v842_v21  ;;  %v869_v30 = vand.u32 2147483648, %v842_v21  ;;  %vm863_vm7 = vweird.f32 %v842_v21  ;;  %v867_v32 = vand.u32 2147483647, %v842_v21 }
 0x27d   :  { %v870_v38 = vor.u32 1.1754944e-38, %v869_v30  ;;  %vm868_vm10 = vcmp.eq.f32.partialorder %v867_v32, 8.507059e+37 }
 0x280   :  { %v968_v22 = vpop.eup %967 }
 0x281   :  { %v970_v23 = vpop.eup %969  ;;  %v841_v24 = vadd.f32 1.0, %v968_v22 }
 0x282   :  { %v859_v26 = vmul.f32 %v970_v23, %v842_v21  ;;  %vm864_vm4 = vweird.f32 %v970_v23 }
 0x283   :  { %971 = vrcp.f32 %v841_v24  ;;  %vm865_vm8 = vmor %vm863_vm7, %vm864_vm4  ;;  %v854_v35 = vand.u32 2147483648, %v841_v24  ;;  %v852_v40 = vand.u32 2147483647, %v841_v24  ;;  %vm848_vm11 = vweird.f32 %v841_v24 }
 0x284   :  { %v860_v27 = vsub.f32 1.0, %v859_v26 }
 0x285   :  { %v855_v44 = vor.u32 1.1754944e-38, %v854_v35  ;;  %vm853_vm13 = vcmp.eq.f32.partialorder %v852_v40, 8.507059e+37 }
 0x286   :  { %v861_v28 = vmul.f32 %v970_v23, %v860_v27 }
 0x288   :  { %v862_v29 = vadd.f32 %v970_v23, %v861_v28 }
 0x289   :  { %v972_v25 = vpop.eup %971 }
 0x28a   :  { %v844_v31 = vmul.f32 %v972_v25, %v841_v24  ;;  %v866_v34 = vsel %vm865_vm8, %v970_v23, %v862_v29  ;;  %vm849_vm9 = vweird.f32 %v972_v25 }
 0x28b   :  { %v871_v42 = vsel %vm868_vm10, %v870_v38, %v866_v34  ;;  %vm850_vm12 = vmor %vm848_vm11, %vm849_vm9 }
 0x28c   :  { %v845_v51 = vsub.f32 1.0, %v844_v31  ;;  %v875_v46 = vrot.slane %v871_v42, 6 }
 0x28e   :  { %v846_v39 = vmul.f32 %v972_v25, %v845_v51 }
 0x290   :  { %v847_v43 = vadd.f32 %v972_v25, %v846_v39 }
 0x292   :  { %v851_v45 = vsel %vm850_vm12, %v972_v25, %v847_v43 }
 0x293   :  { %v856_v47 = vsel %vm853_vm13, %v855_v44, %v851_v45 }
 0x294   :  { %v876_v50 = vsel %vm98_vm1, %v856_v47, %v875_v46 }
 0x295   :  { %878 = vst [vmem:[#allocation10] sm:$0xf] %v876_v50 }
 0x296   :  { %889 = dma.vmem_to_hbm [thread:$0]  %s885_s1, 64, %s887_s22, [#allocation7]  }
 0x297   :  { %1037 = dma.done.wait [#allocation7], 64  }
 0x298   :  { %1038 = vsyncadd [#allocation7], 4294967232 }
 0x299   :  { %894 = vsyncpa [#allocation6], 1 }
 0x29a   :  { %895 = vsyncpa [#allocation7], 1 }
 0x29b   :  { %896 = vsyncpa [#allocation8], 1 }

</bundles_post_ra>
